<compile_context>
chip_gen: v7x
topology: tpu7x:2x2x1
jax: 0.10.0
libtpu: 0.0.40
codegen_flags: <defaults>
</compile_context>

<pallas_src>
import jax
import jax.numpy as jnp
from jax.experimental import pallas as pl
from jax.experimental.pallas import tpu as pltpu

K = 7                 # conv kernel size
PAD = 3               # SAME padding for the 7x7 convs
EPS = 1e-5            # nn.BatchNorm2d default eps
NPAIR = (K + 1) // 2  # paired kh taps -> 4 MXU matmuls per conv


# --------------------------- kernel (closure) ---------------------------------
def _make_kernel(N, H, W, Ci, Co):
    NH = N * H
    WCi = W * Ci
    WCo = W * Co
    inv_cnt = 1.0 / float(N * H * W)
    if Co & (Co - 1) == 0:                      # power-of-two channel count
        chan = lambda a: jnp.bitwise_and(a, Co - 1)
    else:
        chan = lambda a: a % Co

    def kernel(x_ref, t1_ref, t2_ref, p_ref, out_ref, xpad_ref, ypad_ref):
        # per-channel grouping matrix built in-kernel (saves a 64 KiB DMA)
        ri = jax.lax.broadcasted_iota(jnp.int32, (WCo, WCo), 0)
        ci = jax.lax.broadcasted_iota(jnp.int32, (WCo, WCo), 1)
        m = (chan(ri) == chan(ci)).astype(jnp.float32)

        g1 = p_ref[0:1, :]
        bb1 = p_ref[1:2, :]
        g2 = p_ref[2:3, :]
        bb2 = p_ref[3:4, :]
        b3 = p_ref[4:5, :]

        def conv_pairs(buf_ref, t_ref, cw2):
            # paired kh taps: each matmul contracts over [row(kh) | row(kh+1)]
            # lane halves of the dual-lane padded buffer.
            acc = None
            for p in range(NPAIR):
                slab = buf_ref[:, 2 * p:2 * p + H, :].reshape(NH, cw2)
                part = jnp.dot(slab, t_ref[p],
                               preferred_element_type=jnp.float32)
                acc = part if acc is None else acc + part
            return acc

        def batchnorm(z, gamma, beta):
            # training-mode BN over (N,H,W): single-pass sum / sum-of-squares,
            # one stacked (2, WCo) x (WCo, WCo) grouping matmul.
            s = jnp.sum(z, axis=0, keepdims=True)
            q = jnp.sum(z * z, axis=0, keepdims=True)
            agg = jnp.dot(jnp.concatenate([s, q], axis=0), m,
                          preferred_element_type=jnp.float32) * inv_cnt
            mean = agg[0:1, :]
            var = jnp.maximum(agg[1:2, :] - mean * mean, 0.0)
            return (z - mean) * jax.lax.rsqrt(var + EPS) * gamma + beta

        # stage x into the dual-lane-half, H-padded buffer:
        #   lanes [0:WCi]      row r -> x_pad[r]
        #   lanes [WCi:2*WCi]  row r -> x_pad[r+1]
        xpad_ref[...] = jnp.zeros_like(xpad_ref)
        xi = x_ref[...]
        xpad_ref[:, PAD:PAD + H, :WCi] = xi
        xpad_ref[:, PAD - 1:PAD - 1 + H, WCi:] = xi

        # ---- conv1 (+ fused 1x1 skip): 4 matmuls, output lanes [conv1 | skip]
        acc1 = conv_pairs(xpad_ref, t1_ref, 2 * WCi)        # (NH, 2*WCo)
        y = jnp.maximum(batchnorm(acc1[:, :WCo], g1, bb1), 0.0)
        skip = acc1[:, WCo:] + b3

        # stage the relu output the same way for conv2
        ypad_ref[...] = jnp.zeros_like(ypad_ref)
        y3 = y.reshape(N, H, WCo).astype(ypad_ref.dtype)
        ypad_ref[:, PAD:PAD + H, :WCo] = y3
        ypad_ref[:, PAD - 1:PAD - 1 + H, WCo:] = y3

        # ---- conv2 + bn2: 4 matmuls -----------------------------------------
        y2 = batchnorm(conv_pairs(ypad_ref, t2_ref, 2 * WCo), g2, bb2)

        # ---- residual add + relu (lane-dense store) ---------------------------
        out_ref[...] = jnp.maximum(y2 + skip, 0.0)

    return kernel


# --------------------------- wrapper-side repacking ----------------------------
def _width_toeplitz(w_hwio, W):
    """(K, K, Cin, Co) HWIO conv weight -> (K, W*Cin, W*Co) block-Toeplitz
    weights implementing the width taps + SAME width padding of a 7x7 conv."""
    K_, _, Cin, Co = w_hwio.shape
    wi = jnp.arange(W)[:, None]          # input width index  (rows)
    wo = jnp.arange(W)[None, :]          # output width index (cols)
    kw = wi - wo + PAD                   # (W, W)
    valid = (kw >= 0) & (kw < K_)
    g = w_hwio[:, jnp.clip(kw, 0, K_ - 1), :, :]          # (K, W, W, Cin, Co)
    g = jnp.where(valid[None, :, :, None, None], g, 0.0)
    return jnp.transpose(g, (0, 1, 3, 2, 4)).reshape(K_, W * Cin, W * Co)


def _paired_toeplitz(w_hwio, W, skip_w=None):
    """Pair adjacent kh taps -> (NPAIR, 2*W*Cin, n_out). Optionally fuse the
    1x1 skip weight into the kh=PAD tap's pair as extra output columns."""
    t = _width_toeplitz(w_hwio, W)                         # (K, cw, cwo)
    K_, cw, cwo = t.shape
    t = jnp.concatenate(
        [t, jnp.zeros((2 * NPAIR - K_, cw, cwo), t.dtype)], axis=0)
    tp = t.reshape(NPAIR, 2 * cw, cwo)                     # [t[2p]; t[2p+1]]
    if skip_w is not None:
        blk = jnp.zeros((NPAIR, 2 * cw, skip_w.shape[-1]), t.dtype)
        # kh = PAD (= 3, odd) is the second tap of pair PAD // 2.
        blk = blk.at[PAD // 2, cw:, :].set(skip_w)
        tp = jnp.concatenate([tp, blk], axis=-1)
    return tp


def _full_spec(shape):
    nd = len(shape)
    return pl.BlockSpec(shape, lambda i, _nd=nd: (0,) * _nd)


def residual_forward(x_nchw, params, matmul_dtype=jnp.bfloat16):
    """Forward of Residual(use_1x1conv=True, stride=1) with training-mode BN.
    NCHW in / NCHW out. matmul_dtype = MXU operand dtype (bf16 default)."""
    N, Ci, H, W = x_nchw.shape
    Co = params["w1"].shape[-1]
    Hp = H + 2 * PAD
    WCi, WCo = W * Ci, W * Co

    # NHWC with (W, C) fused into the lane dim; H-padding happens in-kernel.
    # TODO(synk): if this block is stacked, keep activations in this fused
    # layout between blocks to drop the transpose/reshape glue entirely.
    x = jnp.transpose(x_nchw, (0, 2, 3, 1)).reshape(N, H, WCi).astype(matmul_dtype)

    skip_w = jnp.kron(jnp.eye(W, dtype=jnp.float32),
                      params["w3"].reshape(Ci, Co))                  # (WCi, WCo)
    t1 = _paired_toeplitz(params["w1"], W, skip_w).astype(matmul_dtype)  # (4, 2*WCi, 2*WCo)
    t2 = _paired_toeplitz(params["w2"], W).astype(matmul_dtype)          # (4, 2*WCo, WCo)

    # b1/b2 dropped (cancelled exactly by training-mode BN); remaining
    # per-channel params packed into one (8, W*Co) array = one DMA.
    tile_c = lambda v: jnp.tile(v.astype(jnp.float32), W)
    packed = jnp.zeros((8, WCo), jnp.float32)
    for r, name in enumerate(("g1", "bb1", "g2", "bb2", "b3")):
        packed = packed.at[r].set(tile_c(params[name]))

    inputs = (x, t1, t2, packed)

    out2d = pl.pallas_call(
        _make_kernel(N, H, W, Ci, Co),
        out_shape=jax.ShapeDtypeStruct((N * H, WCo), jnp.float32),
        grid=(1,),
        in_specs=[_full_spec(a.shape) for a in inputs],
        out_specs=_full_spec((N * H, WCo)),
        scratch_shapes=[pltpu.VMEM((N, Hp, 2 * WCi), matmul_dtype),
                        pltpu.VMEM((N, Hp, 2 * WCo), matmul_dtype)],
        compiler_params=pltpu.CompilerParams(
            dimension_semantics=("arbitrary",)),
    )(*inputs)

    out = out2d.reshape(N, H, W, Co)
    return jnp.transpose(out, (0, 3, 1, 2))                          # NCHW


# ------------------------------ pure-JAX reference -----------------------------
def residual_ref(x_nchw, params):
    x = jnp.transpose(x_nchw, (0, 2, 3, 1)).astype(jnp.float32)

    def conv(z, w_hwio, b, pad):
        y = jax.lax.conv_general_dilated(
            z, w_hwio, window_strides=(1, 1),
            padding=[(pad, pad), (pad, pad)],
            dimension_numbers=("NHWC", "HWIO", "NHWC"))
        return y + b.reshape(1, 1, 1, -1)

    def bn(z, g, bta):
        mean = jnp.mean(z, axis=(0, 1, 2), keepdims=True)
        var = jnp.mean((z - mean) ** 2, axis=(0, 1, 2), keepdims=True)
        return (z - mean) / jnp.sqrt(var + EPS) * g.reshape(1, 1, 1, -1) \
            + bta.reshape(1, 1, 1, -1)

    y = jax.nn.relu(bn(conv(x, params["w1"], params["b1"], PAD),
                       params["g1"], params["bb1"]))
    y = bn(conv(y, params["w2"], params["b2"], PAD), params["g2"], params["bb2"])
    skip = conv(x, params["w3"], params["b3"], 0)
    out = jax.nn.relu(y + skip)
    return jnp.transpose(out, (0, 3, 1, 2))


if __name__ == "__main__":
    N, Ci, Co, H, W = 2, 4, 8, 16, 16   # use_1x1conv=True, stride=1

    key = jax.random.PRNGKey(0)
    ks = jax.random.split(key, 8)
    x = jax.random.normal(ks[0], (N, Ci, H, W), jnp.float32)

    params = {
        "w1": jax.random.normal(ks[1], (K, K, Ci, Co), jnp.float32) * 0.1,
        "b1": jax.random.normal(ks[2], (Co,), jnp.float32) * 0.1,
        "g1": jnp.ones((Co,), jnp.float32),
        "bb1": jnp.zeros((Co,), jnp.float32),
        "w2": jax.random.normal(ks[3], (K, K, Co, Co), jnp.float32) * 0.1,
        "b2": jax.random.normal(ks[4], (Co,), jnp.float32) * 0.1,
        "g2": jnp.ones((Co,), jnp.float32),
        "bb2": jnp.zeros((Co,), jnp.float32),
        "w3": jax.random.normal(ks[5], (1, 1, Ci, Co), jnp.float32) * 0.1,
        "b3": jax.random.normal(ks[6], (Co,), jnp.float32) * 0.1,
    }

    ref = residual_ref(x, params)

    # f32 MXU operand path (tight tolerance correctness check)
    out_f32 = jax.block_until_ready(residual_forward(x, params, jnp.float32))
    assert out_f32.shape == (N, Co, H, W), out_f32.shape
    err_f32 = float(jnp.max(jnp.abs(out_f32 - ref)))
    assert err_f32 < 1e-2, f"f32 mismatch vs reference: {err_f32}"

    # default bf16 MXU operand path (f32 accumulation / BN)
    out_bf16 = jax.block_until_ready(residual_forward(x, params))
    err_bf16 = float(jnp.max(jnp.abs(out_bf16 - ref)))
    assert err_bf16 < 2e-1, f"bf16 mismatch vs reference: {err_bf16}"

    print("KERNEL_OK")
</pallas_src>

<mosaic_0001>
module attributes {stable_mosaic.version = 11 : i64} {
  func.func @kernel(%arg0: i32, %arg1: memref<2x16x64xf32, #tpu.memory_space<vmem>>, %arg2: memref<4x128x256xf32, #tpu.memory_space<vmem>>, %arg3: memref<4x256x128xf32, #tpu.memory_space<vmem>>, %arg4: memref<8x128xf32, #tpu.memory_space<vmem>>, %arg5: memref<32x128xf32, #tpu.memory_space<vmem>>, %arg6: memref<2x22x128xf32, #tpu.memory_space<vmem>>, %arg7: memref<2x22x256xf32, #tpu.memory_space<vmem>>) attributes {dimension_semantics = [#tpu.dimension_semantics<arbitrary>], iteration_bounds = array<i64: 1>, scalar_prefetch = 0 : i64, scratch_operands = 2 : i64, tpu.core_type = #tpu.core_type<tc>, window_params = [{pipeline_mode = #tpu.pipeline_mode<synchronous>, transform_indices = @transform_0, window_bounds = array<i64: 2, 16, 64>}, {pipeline_mode = #tpu.pipeline_mode<synchronous>, transform_indices = @transform_1, window_bounds = array<i64: 4, 128, 256>}, {pipeline_mode = #tpu.pipeline_mode<synchronous>, transform_indices = @transform_2, window_bounds = array<i64: 4, 256, 128>}, {pipeline_mode = #tpu.pipeline_mode<synchronous>, transform_indices = @transform_3, window_bounds = array<i64: 8, 128>}, {pipeline_mode = #tpu.pipeline_mode<synchronous>, transform_indices = @transform_4, window_bounds = array<i64: 32, 128>}]} {
    %0 = tpu.iota {dimensions = array<i32: 0>} : vector<128x128xi32>
    %1 = tpu.iota {dimensions = array<i32: 1>} : vector<128x128xi32>
    %c7_i32 = arith.constant 7 : i32
    %2 = vector.broadcast %c7_i32 : i32 to vector<128x128xi32>
    %3 = arith.andi %0, %2 : vector<128x128xi32>
    %c7_i32_0 = arith.constant 7 : i32
    %4 = vector.broadcast %c7_i32_0 : i32 to vector<128x128xi32>
    %5 = arith.andi %1, %4 : vector<128x128xi32>
    %6 = arith.cmpi eq, %3, %5 : vector<128x128xi32>
    %7 = arith.extui %6 : vector<128x128xi1> to vector<128x128xi32>
    %8 = arith.sitofp %7 : vector<128x128xi32> to vector<128x128xf32>
    %c0 = arith.constant 0 : index
    %c0_1 = arith.constant 0 : index
    %9 = vector.load %arg4[%c0, %c0_1] : memref<8x128xf32, #tpu.memory_space<vmem>>, vector<1x128xf32>
    %c1 = arith.constant 1 : index
    %c0_2 = arith.constant 0 : index
    %10 = vector.load %arg4[%c1, %c0_2] : memref<8x128xf32, #tpu.memory_space<vmem>>, vector<1x128xf32>
    %c2 = arith.constant 2 : index
    %c0_3 = arith.constant 0 : index
    %11 = vector.load %arg4[%c2, %c0_3] : memref<8x128xf32, #tpu.memory_space<vmem>>, vector<1x128xf32>
    %c3 = arith.constant 3 : index
    %c0_4 = arith.constant 0 : index
    %12 = vector.load %arg4[%c3, %c0_4] : memref<8x128xf32, #tpu.memory_space<vmem>>, vector<1x128xf32>
    %c4 = arith.constant 4 : index
    %c0_5 = arith.constant 0 : index
    %13 = vector.load %arg4[%c4, %c0_5] : memref<8x128xf32, #tpu.memory_space<vmem>>, vector<1x128xf32>
    %cst = arith.constant 0.000000e+00 : f32
    %14 = vector.broadcast %cst : f32 to vector<2x22x128xf32>
    %c0_6 = arith.constant 0 : index
    %c0_7 = arith.constant 0 : index
    %c0_8 = arith.constant 0 : index
    %15 = vector.load %arg6[%c0_6, %c0_7, %c0_8] : memref<2x22x128xf32, #tpu.memory_space<vmem>>, vector<2x22x128xf32>
    tpu.vector_store %arg6[%c0_6, %c0_7, %c0_8], %14 {strides = array<i32>} : memref<2x22x128xf32, #tpu.memory_space<vmem>>, vector<2x22x128xf32>,
    %c0_9 = arith.constant 0 : index
    %c0_10 = arith.constant 0 : index
    %c0_11 = arith.constant 0 : index
    %16 = vector.load %arg1[%c0_9, %c0_10, %c0_11] : memref<2x16x64xf32, #tpu.memory_space<vmem>>, vector<2x16x64xf32>
    %c0_12 = arith.constant 0 : index
    %c3_13 = arith.constant 3 : index
    %c0_14 = arith.constant 0 : index
    %17 = vector.load %arg6[%c0_12, %c3_13, %c0_14] : memref<2x22x128xf32, #tpu.memory_space<vmem>>, vector<2x16x64xf32>
    tpu.vector_store %arg6[%c0_12, %c3_13, %c0_14], %16 {strides = array<i32>} : memref<2x22x128xf32, #tpu.memory_space<vmem>>, vector<2x16x64xf32>,
    %c0_15 = arith.constant 0 : index
    %c2_16 = arith.constant 2 : index
    %c64 = arith.constant 64 : index
    %18 = vector.load %arg6[%c0_15, %c2_16, %c64] : memref<2x22x128xf32, #tpu.memory_space<vmem>>, vector<2x16x64xf32>
    tpu.vector_store %arg6[%c0_15, %c2_16, %c64], %16 {strides = array<i32>} : memref<2x22x128xf32, #tpu.memory_space<vmem>>, vector<2x16x64xf32>,
    %c0_17 = arith.constant 0 : index
    %c0_18 = arith.constant 0 : index
    %c0_19 = arith.constant 0 : index
    %19 = vector.load %arg6[%c0_17, %c0_18, %c0_19] : memref<2x22x128xf32, #tpu.memory_space<vmem>>, vector<2x16x128xf32>
    %20 = vector.shape_cast %19 : vector<2x16x128xf32> to vector<32x128xf32>
    %c0_20 = arith.constant 0 : index
    %c0_21 = arith.constant 0 : index
    %c0_22 = arith.constant 0 : index
    %21 = vector.load %arg2[%c0_20, %c0_21, %c0_22] : memref<4x128x256xf32, #tpu.memory_space<vmem>>, vector<1x128x256xf32>
    %22 = vector.shape_cast %21 : vector<1x128x256xf32> to vector<128x256xf32>
    %cst_23 = arith.constant dense<0.000000e+00> : vector<32x256xf32>
    %23 = tpu.matmul %20, %22, %cst_23 {dimension_numbers = #tpu.dot_dimension_numbers<[1], [0], [0], [1], [0, 0, 1, 1], [], []>} : vector<32x128xf32>, vector<128x256xf32>, vector<32x256xf32> -> vector<32x256xf32>
    %c0_24 = arith.constant 0 : index
    %c2_25 = arith.constant 2 : index
    %c0_26 = arith.constant 0 : index
    %24 = vector.load %arg6[%c0_24, %c2_25, %c0_26] : memref<2x22x128xf32, #tpu.memory_space<vmem>>, vector<2x16x128xf32>
    %25 = vector.shape_cast %24 : vector<2x16x128xf32> to vector<32x128xf32>
    %c1_27 = arith.constant 1 : index
    %c0_28 = arith.constant 0 : index
    %c0_29 = arith.constant 0 : index
    %26 = vector.load %arg2[%c1_27, %c0_28, %c0_29] : memref<4x128x256xf32, #tpu.memory_space<vmem>>, vector<1x128x256xf32>
    %27 = vector.shape_cast %26 : vector<1x128x256xf32> to vector<128x256xf32>
    %cst_30 = arith.constant dense<0.000000e+00> : vector<32x256xf32>
    %28 = tpu.matmul %25, %27, %cst_30 {dimension_numbers = #tpu.dot_dimension_numbers<[1], [0], [0], [1], [0, 0, 1, 1], [], []>} : vector<32x128xf32>, vector<128x256xf32>, vector<32x256xf32> -> vector<32x256xf32>
    %29 = arith.addf %23, %28 : vector<32x256xf32>
    %c0_31 = arith.constant 0 : index
    %c4_32 = arith.constant 4 : index
    %c0_33 = arith.constant 0 : index
    %30 = vector.load %arg6[%c0_31, %c4_32, %c0_33] : memref<2x22x128xf32, #tpu.memory_space<vmem>>, vector<2x16x128xf32>
    %31 = vector.shape_cast %30 : vector<2x16x128xf32> to vector<32x128xf32>
    %c2_34 = arith.constant 2 : index
    %c0_35 = arith.constant 0 : index
    %c0_36 = arith.constant 0 : index
    %32 = vector.load %arg2[%c2_34, %c0_35, %c0_36] : memref<4x128x256xf32, #tpu.memory_space<vmem>>, vector<1x128x256xf32>
    %33 = vector.shape_cast %32 : vector<1x128x256xf32> to vector<128x256xf32>
    %cst_37 = arith.constant dense<0.000000e+00> : vector<32x256xf32>
    %34 = tpu.matmul %31, %33, %cst_37 {dimension_numbers = #tpu.dot_dimension_numbers<[1], [0], [0], [1], [0, 0, 1, 1], [], []>} : vector<32x128xf32>, vector<128x256xf32>, vector<32x256xf32> -> vector<32x256xf32>
    %35 = arith.addf %29, %34 : vector<32x256xf32>
    %c0_38 = arith.constant 0 : index
    %c6 = arith.constant 6 : index
    %c0_39 = arith.constant 0 : index
    %36 = vector.load %arg6[%c0_38, %c6, %c0_39] : memref<2x22x128xf32, #tpu.memory_space<vmem>>, vector<2x16x128xf32>
    %37 = vector.shape_cast %36 : vector<2x16x128xf32> to vector<32x128xf32>
    %c3_40 = arith.constant 3 : index
    %c0_41 = arith.constant 0 : index
    %c0_42 = arith.constant 0 : index
    %38 = vector.load %arg2[%c3_40, %c0_41, %c0_42] : memref<4x128x256xf32, #tpu.memory_space<vmem>>, vector<1x128x256xf32>
    %39 = vector.shape_cast %38 : vector<1x128x256xf32> to vector<128x256xf32>
    %cst_43 = arith.constant dense<0.000000e+00> : vector<32x256xf32>
    %40 = tpu.matmul %37, %39, %cst_43 {dimension_numbers = #tpu.dot_dimension_numbers<[1], [0], [0], [1], [0, 0, 1, 1], [], []>} : vector<32x128xf32>, vector<128x256xf32>, vector<32x256xf32> -> vector<32x256xf32>
    %41 = arith.addf %35, %40 : vector<32x256xf32>
    %42 = vector.extract_strided_slice %41 {offsets = [0, 0], sizes = [32, 128], strides = [1, 1]} : vector<32x256xf32> to vector<32x128xf32>
    %cst_44 = arith.constant dense<0.000000e+00> : vector<128xf32>
    %43 = vector.multi_reduction <add>, %42, %cst_44 [0] : vector<32x128xf32> to vector<128xf32>
    %44 = vector.shape_cast %43 : vector<128xf32> to vector<1x128xf32>
    %45 = arith.mulf %42, %42 : vector<32x128xf32>
    %cst_45 = arith.constant dense<0.000000e+00> : vector<128xf32>
    %46 = vector.multi_reduction <add>, %45, %cst_45 [0] : vector<32x128xf32> to vector<128xf32>
    %47 = vector.shape_cast %46 : vector<128xf32> to vector<1x128xf32>
    %48 = tpu.concatenate %44, %47 in 0 : vector<1x128xf32>, vector<1x128xf32> -> vector<2x128xf32>
    %cst_46 = arith.constant dense<0.000000e+00> : vector<2x128xf32>
    %49 = tpu.matmul %48, %8, %cst_46 {dimension_numbers = #tpu.dot_dimension_numbers<[1], [0], [0], [1], [0, 0, 1, 1], [], []>} : vector<2x128xf32>, vector<128x128xf32>, vector<2x128xf32> -> vector<2x128xf32>
    %cst_47 = arith.constant 0.001953125 : f32
    %50 = vector.broadcast %cst_47 : f32 to vector<2x128xf32>
    %51 = arith.mulf %49, %50 : vector<2x128xf32>
    %52 = vector.extract_strided_slice %51 {offsets = [0, 0], sizes = [1, 128], strides = [1, 1]} : vector<2x128xf32> to vector<1x128xf32>
    %53 = vector.extract_strided_slice %51 {offsets = [1, 0], sizes = [1, 128], strides = [1, 1]} : vector<2x128xf32> to vector<1x128xf32>
    %54 = arith.mulf %52, %52 : vector<1x128xf32>
    %55 = arith.subf %53, %54 : vector<1x128xf32>
    %cst_48 = arith.constant 0.000000e+00 : f32
    %56 = vector.broadcast %cst_48 : f32 to vector<1x128xf32>
    %57 = arith.maximumf %55, %56 : vector<1x128xf32>
    %58 = vector.broadcast %52 : vector<1x128xf32> to vector<32x128xf32>
    %59 = arith.subf %42, %58 : vector<32x128xf32>
    %cst_49 = arith.constant 9.99999974E-6 : f32
    %60 = vector.broadcast %cst_49 : f32 to vector<1x128xf32>
    %61 = arith.addf %57, %60 : vector<1x128xf32>
    %62 = math.rsqrt %61 : vector<1x128xf32>
    %63 = vector.broadcast %62 : vector<1x128xf32> to vector<32x128xf32>
    %64 = arith.mulf %59, %63 : vector<32x128xf32>
    %65 = vector.broadcast %9 : vector<1x128xf32> to vector<32x128xf32>
    %66 = arith.mulf %64, %65 : vector<32x128xf32>
    %67 = vector.broadcast %10 : vector<1x128xf32> to vector<32x128xf32>
    %68 = arith.addf %66, %67 : vector<32x128xf32>
    %cst_50 = arith.constant 0.000000e+00 : f32
    %69 = vector.broadcast %cst_50 : f32 to vector<32x128xf32>
    %70 = arith.maximumf %68, %69 : vector<32x128xf32>
    %71 = vector.extract_strided_slice %41 {offsets = [0, 128], sizes = [32, 128], strides = [1, 1]} : vector<32x256xf32> to vector<32x128xf32>
    %72 = vector.broadcast %13 : vector<1x128xf32> to vector<32x128xf32>
    %73 = arith.addf %71, %72 : vector<32x128xf32>
    %cst_51 = arith.constant 0.000000e+00 : f32
    %74 = vector.broadcast %cst_51 : f32 to vector<2x22x256xf32>
    %c0_52 = arith.constant 0 : index
    %c0_53 = arith.constant 0 : index
    %c0_54 = arith.constant 0 : index
    %75 = vector.load %arg7[%c0_52, %c0_53, %c0_54] : memref<2x22x256xf32, #tpu.memory_space<vmem>>, vector<2x22x256xf32>
    tpu.vector_store %arg7[%c0_52, %c0_53, %c0_54], %74 {strides = array<i32>} : memref<2x22x256xf32, #tpu.memory_space<vmem>>, vector<2x22x256xf32>,
    %76 = vector.shape_cast %70 : vector<32x128xf32> to vector<2x16x128xf32>
    %c0_55 = arith.constant 0 : index
    %c3_56 = arith.constant 3 : index
    %c0_57 = arith.constant 0 : index
    %77 = vector.load %arg7[%c0_55, %c3_56, %c0_57] : memref<2x22x256xf32, #tpu.memory_space<vmem>>, vector<2x16x128xf32>
    tpu.vector_store %arg7[%c0_55, %c3_56, %c0_57], %76 {strides = array<i32>} : memref<2x22x256xf32, #tpu.memory_space<vmem>>, vector<2x16x128xf32>,
    %c0_58 = arith.constant 0 : index
    %c2_59 = arith.constant 2 : index
    %c128 = arith.constant 128 : index
    %78 = vector.load %arg7[%c0_58, %c2_59, %c128] : memref<2x22x256xf32, #tpu.memory_space<vmem>>, vector<2x16x128xf32>
    tpu.vector_store %arg7[%c0_58, %c2_59, %c128], %76 {strides = array<i32>} : memref<2x22x256xf32, #tpu.memory_space<vmem>>, vector<2x16x128xf32>,
    %c0_60 = arith.constant 0 : index
    %c0_61 = arith.constant 0 : index
    %c0_62 = arith.constant 0 : index
    %79 = vector.load %arg7[%c0_60, %c0_61, %c0_62] : memref<2x22x256xf32, #tpu.memory_space<vmem>>, vector<2x16x256xf32>
    %80 = vector.shape_cast %79 : vector<2x16x256xf32> to vector<32x256xf32>
    %c0_63 = arith.constant 0 : index
    %c0_64 = arith.constant 0 : index
    %c0_65 = arith.constant 0 : index
    %81 = vector.load %arg3[%c0_63, %c0_64, %c0_65] : memref<4x256x128xf32, #tpu.memory_space<vmem>>, vector<1x256x128xf32>
    %82 = vector.shape_cast %81 : vector<1x256x128xf32> to vector<256x128xf32>
    %cst_66 = arith.constant dense<0.000000e+00> : vector<32x128xf32>
    %83 = tpu.matmul %80, %82, %cst_66 {dimension_numbers = #tpu.dot_dimension_numbers<[1], [0], [0], [1], [0, 0, 1, 1], [], []>} : vector<32x256xf32>, vector<256x128xf32>, vector<32x128xf32> -> vector<32x128xf32>
    %c0_67 = arith.constant 0 : index
    %c2_68 = arith.constant 2 : index
    %c0_69 = arith.constant 0 : index
    %84 = vector.load %arg7[%c0_67, %c2_68, %c0_69] : memref<2x22x256xf32, #tpu.memory_space<vmem>>, vector<2x16x256xf32>
    %85 = vector.shape_cast %84 : vector<2x16x256xf32> to vector<32x256xf32>
    %c1_70 = arith.constant 1 : index
    %c0_71 = arith.constant 0 : index
    %c0_72 = arith.constant 0 : index
    %86 = vector.load %arg3[%c1_70, %c0_71, %c0_72] : memref<4x256x128xf32, #tpu.memory_space<vmem>>, vector<1x256x128xf32>
    %87 = vector.shape_cast %86 : vector<1x256x128xf32> to vector<256x128xf32>
    %cst_73 = arith.constant dense<0.000000e+00> : vector<32x128xf32>
    %88 = tpu.matmul %85, %87, %cst_73 {dimension_numbers = #tpu.dot_dimension_numbers<[1], [0], [0], [1], [0, 0, 1, 1], [], []>} : vector<32x256xf32>, vector<256x128xf32>, vector<32x128xf32> -> vector<32x128xf32>
    %89 = arith.addf %83, %88 : vector<32x128xf32>
    %c0_74 = arith.constant 0 : index
    %c4_75 = arith.constant 4 : index
    %c0_76 = arith.constant 0 : index
    %90 = vector.load %arg7[%c0_74, %c4_75, %c0_76] : memref<2x22x256xf32, #tpu.memory_space<vmem>>, vector<2x16x256xf32>
    %91 = vector.shape_cast %90 : vector<2x16x256xf32> to vector<32x256xf32>
    %c2_77 = arith.constant 2 : index
    %c0_78 = arith.constant 0 : index
    %c0_79 = arith.constant 0 : index
    %92 = vector.load %arg3[%c2_77, %c0_78, %c0_79] : memref<4x256x128xf32, #tpu.memory_space<vmem>>, vector<1x256x128xf32>
    %93 = vector.shape_cast %92 : vector<1x256x128xf32> to vector<256x128xf32>
    %cst_80 = arith.constant dense<0.000000e+00> : vector<32x128xf32>
    %94 = tpu.matmul %91, %93, %cst_80 {dimension_numbers = #tpu.dot_dimension_numbers<[1], [0], [0], [1], [0, 0, 1, 1], [], []>} : vector<32x256xf32>, vector<256x128xf32>, vector<32x128xf32> -> vector<32x128xf32>
    %95 = arith.addf %89, %94 : vector<32x128xf32>
    %c0_81 = arith.constant 0 : index
    %c6_82 = arith.constant 6 : index
    %c0_83 = arith.constant 0 : index
    %96 = vector.load %arg7[%c0_81, %c6_82, %c0_83] : memref<2x22x256xf32, #tpu.memory_space<vmem>>, vector<2x16x256xf32>
    %97 = vector.shape_cast %96 : vector<2x16x256xf32> to vector<32x256xf32>
    %c3_84 = arith.constant 3 : index
    %c0_85 = arith.constant 0 : index
    %c0_86 = arith.constant 0 : index
    %98 = vector.load %arg3[%c3_84, %c0_85, %c0_86] : memref<4x256x128xf32, #tpu.memory_space<vmem>>, vector<1x256x128xf32>
    %99 = vector.shape_cast %98 : vector<1x256x128xf32> to vector<256x128xf32>
    %cst_87 = arith.constant dense<0.000000e+00> : vector<32x128xf32>
    %100 = tpu.matmul %97, %99, %cst_87 {dimension_numbers = #tpu.dot_dimension_numbers<[1], [0], [0], [1], [0, 0, 1, 1], [], []>} : vector<32x256xf32>, vector<256x128xf32>, vector<32x128xf32> -> vector<32x128xf32>
    %101 = arith.addf %95, %100 : vector<32x128xf32>
    %cst_88 = arith.constant dense<0.000000e+00> : vector<128xf32>
    %102 = vector.multi_reduction <add>, %101, %cst_88 [0] : vector<32x128xf32> to vector<128xf32>
    %103 = vector.shape_cast %102 : vector<128xf32> to vector<1x128xf32>
    %104 = arith.mulf %101, %101 : vector<32x128xf32>
    %cst_89 = arith.constant dense<0.000000e+00> : vector<128xf32>
    %105 = vector.multi_reduction <add>, %104, %cst_89 [0] : vector<32x128xf32> to vector<128xf32>
    %106 = vector.shape_cast %105 : vector<128xf32> to vector<1x128xf32>
    %107 = tpu.concatenate %103, %106 in 0 : vector<1x128xf32>, vector<1x128xf32> -> vector<2x128xf32>
    %cst_90 = arith.constant dense<0.000000e+00> : vector<2x128xf32>
    %108 = tpu.matmul %107, %8, %cst_90 {dimension_numbers = #tpu.dot_dimension_numbers<[1], [0], [0], [1], [0, 0, 1, 1], [], []>} : vector<2x128xf32>, vector<128x128xf32>, vector<2x128xf32> -> vector<2x128xf32>
    %cst_91 = arith.constant 0.001953125 : f32
    %109 = vector.broadcast %cst_91 : f32 to vector<2x128xf32>
    %110 = arith.mulf %108, %109 : vector<2x128xf32>
    %111 = vector.extract_strided_slice %110 {offsets = [0, 0], sizes = [1, 128], strides = [1, 1]} : vector<2x128xf32> to vector<1x128xf32>
    %112 = vector.extract_strided_slice %110 {offsets = [1, 0], sizes = [1, 128], strides = [1, 1]} : vector<2x128xf32> to vector<1x128xf32>
    %113 = arith.mulf %111, %111 : vector<1x128xf32>
    %114 = arith.subf %112, %113 : vector<1x128xf32>
    %cst_92 = arith.constant 0.000000e+00 : f32
    %115 = vector.broadcast %cst_92 : f32 to vector<1x128xf32>
    %116 = arith.maximumf %114, %115 : vector<1x128xf32>
    %117 = vector.broadcast %111 : vector<1x128xf32> to vector<32x128xf32>
    %118 = arith.subf %101, %117 : vector<32x128xf32>
    %cst_93 = arith.constant 9.99999974E-6 : f32
    %119 = vector.broadcast %cst_93 : f32 to vector<1x128xf32>
    %120 = arith.addf %116, %119 : vector<1x128xf32>
    %121 = math.rsqrt %120 : vector<1x128xf32>
    %122 = vector.broadcast %121 : vector<1x128xf32> to vector<32x128xf32>
    %123 = arith.mulf %118, %122 : vector<32x128xf32>
    %124 = vector.broadcast %11 : vector<1x128xf32> to vector<32x128xf32>
    %125 = arith.mulf %123, %124 : vector<32x128xf32>
    %126 = vector.broadcast %12 : vector<1x128xf32> to vector<32x128xf32>
    %127 = arith.addf %125, %126 : vector<32x128xf32>
    %128 = arith.addf %127, %73 : vector<32x128xf32>
    %cst_94 = arith.constant 0.000000e+00 : f32
    %129 = vector.broadcast %cst_94 : f32 to vector<32x128xf32>
    %130 = arith.maximumf %128, %129 : vector<32x128xf32>
    %c0_95 = arith.constant 0 : index
    %c0_96 = arith.constant 0 : index
    %131 = vector.load %arg5[%c0_95, %c0_96] : memref<32x128xf32, #tpu.memory_space<vmem>>, vector<32x128xf32>
    tpu.vector_store %arg5[%c0_95, %c0_96], %130 {strides = array<i32>} : memref<32x128xf32, #tpu.memory_space<vmem>>, vector<32x128xf32>,
    return
  }
  func.func @transform_0(%arg0: i32) -> (i32, i32, i32) {
    %c0_i32 = arith.constant 0 : i32
    %c0_i32_0 = arith.constant 0 : i32
    %c0_i32_1 = arith.constant 0 : i32
    %c0_i32_2 = arith.constant 0 : i32
    return %c0_i32, %c0_i32_0, %c0_i32_1 : i32, i32, i32
  }
  func.func @transform_1(%arg0: i32) -> (i32, i32, i32) {
    %c0_i32 = arith.constant 0 : i32
    %c0_i32_0 = arith.constant 0 : i32
    %c0_i32_1 = arith.constant 0 : i32
    %c0_i32_2 = arith.constant 0 : i32
    return %c0_i32, %c0_i32_0, %c0_i32_1 : i32, i32, i32
  }
  func.func @transform_2(%arg0: i32) -> (i32, i32, i32) {
    %c0_i32 = arith.constant 0 : i32
    %c0_i32_0 = arith.constant 0 : i32
    %c0_i32_1 = arith.constant 0 : i32
    %c0_i32_2 = arith.constant 0 : i32
    return %c0_i32, %c0_i32_0, %c0_i32_1 : i32, i32, i32
  }
  func.func @transform_3(%arg0: i32) -> (i32, i32) {
    %c0_i32 = arith.constant 0 : i32
    %c0_i32_0 = arith.constant 0 : i32
    %c0_i32_1 = arith.constant 0 : i32
    return %c0_i32, %c0_i32_0 : i32, i32
  }
  func.func @transform_4(%arg0: i32) -> (i32, i32) {
    %c0_i32 = arith.constant 0 : i32
    %c0_i32_0 = arith.constant 0 : i32
    %c0_i32_1 = arith.constant 0 : i32
    return %c0_i32, %c0_i32_0 : i32, i32
  }
}

</mosaic_0001>

<bundles_post_ra>
// kernel: tpu_custom_call.1
= control target key start
LH: loop header
LB: loop body
LE: loop exit
PB: predicated region body
PF: predicated region fallthrough
CT: control target
= control target key end

     0   :  { %9 = vsyncpa [#allocation5], 0  ;;  %s2955_s0 = inlined_call_operand.hbm [shape: f32[2,16,64], index: 0, kind: input, shape index: {}]   ;;  %s2956_s1 = inlined_call_operand.hbm [shape: f32[4,128,256], index: 1, kind: input, shape index: {}]   ;;  %s2957_s2 = inlined_call_operand.hbm [shape: f32[4,256,128], index: 2, kind: input, shape index: {}]   ;;  %s2958_s3 = inlined_call_operand.vmem [shape: f32[8,128], index: 3, kind: input, shape index: {}]   ;;  %s2959_s4 = inlined_call_operand.hbm [shape: f32[32,128], index: 4, kind: output, shape index: {}]  }
   0x1   :  { %10 = vsyncpa [#allocation8], 0 }
   0x2   :  { %11 = vsyncpa [#allocation6], 0  ;;  %s2465_s15 = smov [#allocation7]   ;;  %s2371_s19 = scalar_lea.hbm %s2956_s1, 16384 }
   0x3   :  { %s29_s16 = sshll.u32 %s2465_s15, 4  ;;  %p2372_p0 = scmp.ne.s32.totalorder %s2956_s1, %s2371_s19  ;;  %s30_s16 = int_to_ptr.vmem [resolvable:$true] %s29_s16 }
   0x4   :  { %p2375_p1 = scmp.lt.u32.totalorder %s2371_s19, %s2956_s1 }
   0x6   :  { %p2377_p2 = pnand %p2375_p1, %p2372_p0 }
   0x8   :  { %2380 = shalt.err (!%p2377_p2)
}
   0x9   :  { %s2381_s24 = scalar_lea.vmem %s30_s16, 16384  ;;  %p2386_p4 = scmp.lt.s32.totalorder %s30_s16, %s30_s16 }
   0xa   :  { %p2382_p3 = scmp.ne.s32.totalorder %s30_s16, %s2381_s24  ;;  %p2387_p5 = scmp.lt.s32.totalorder %s2381_s24, %s2381_s24 }
   0xc   :  { %p2388_p6 = por %p2387_p5, %p2386_p4 }
   0xe   :  { %p2389_p7 = pnand %p2388_p6, %p2382_p3 }
  0x10   :  { %2392 = shalt.err (!%p2389_p7)
}
  0x11   :  { %s2466_s25 = smov 256   ;;  %s2467_s26 = smov 16  }
  0x12   :  { %35 = dma.hbm_to_vmem [thread:$0]  %s2956_s1, 16384, %s30_s16, [#allocation8], %s2466_s25, %s2466_s25, %s2467_s26  }
  0x13   :  { %s2468_s29 = smov [#allocation4]   ;;  %s2393_s7 = scalar_lea.hbm %s2955_s0, 512 }
  0x14   :  { %s17_s30 = sshll.u32 %s2468_s29, 4  ;;  %p2394_p8 = scmp.ne.s32.totalorder %s2955_s0, %s2393_s7  ;;  %s18_s30 = int_to_ptr.vmem [resolvable:$true] %s17_s30 }
  0x15   :  { %p2397_p9 = scmp.lt.u32.totalorder %s2393_s7, %s2955_s0 }
  0x17   :  { %p2399_p10 = pnand %p2397_p9, %p2394_p8 }
  0x19   :  { %2402 = shalt.err (!%p2399_p10)
}
  0x1a   :  { %s2403_s12 = scalar_lea.vmem %s18_s30, 512  ;;  %p2408_p12 = scmp.lt.s32.totalorder %s18_s30, %s18_s30 }
  0x1b   :  { %p2404_p11 = scmp.ne.s32.totalorder %s18_s30, %s2403_s12  ;;  %p2409_p13 = scmp.lt.s32.totalorder %s2403_s12, %s2403_s12 }
  0x1d   :  { %p2410_p0 = por %p2409_p13, %p2408_p12 }
  0x1f   :  { %p2411_p1 = pnand %p2410_p0, %p2404_p11 }
  0x21   :  { %2414 = shalt.err (!%p2411_p1)
}
  0x22   :  { %s2469_s1 = smov 128   ;;  %s2470_s13 = smov 8  }
  0x23   :  { %23 = dma.hbm_to_vmem [thread:$0]  %s2955_s0, 512, %s18_s30, [#allocation5], %s2469_s1, %s2469_s1, %s2470_s13  }
  0x24   :  { %s2471_s16 = smov [#allocation9]   ;;  %s2415_s20 = scalar_lea.hbm %s2957_s2, 16384 }
  0x25   :  { %s41_s17 = sshll.u32 %s2471_s16, 4  ;;  %p2416_p2 = scmp.ne.s32.totalorder %s2957_s2, %s2415_s20  ;;  %s42_s17 = int_to_ptr.vmem [resolvable:$true] %s41_s17 }
  0x26   :  { %p2419_p3 = scmp.lt.u32.totalorder %s2415_s20, %s2957_s2 }
  0x28   :  { %p2421_p4 = pnand %p2419_p3, %p2416_p2 }
  0x2a   :  { %2424 = shalt.err (!%p2421_p4)
}
  0x2b   :  { %s2425_s25 = scalar_lea.vmem %s42_s17, 16384  ;;  %p2430_p6 = scmp.lt.s32.totalorder %s42_s17, %s42_s17 }
  0x2c   :  { %p2426_p5 = scmp.ne.s32.totalorder %s42_s17, %s2425_s25  ;;  %p2431_p7 = scmp.lt.s32.totalorder %s2425_s25, %s2425_s25 }
  0x2e   :  { %p2432_p8 = por %p2431_p7, %p2430_p6 }
  0x30   :  { %p2433_p9 = pnand %p2432_p8, %p2426_p5 }
  0x32   :  { %2436 = shalt.err (!%p2433_p9)
}
  0x33   :  { %47 = dma.hbm_to_vmem [thread:$0]  %s2957_s2, 16384, %s42_s17, [#allocation8], %s2469_s1, %s2469_s1, %s2470_s13  }
  0x34   :  { %2459 = dma.done.wait [#allocation5], 512  }
  0x35   :  { %2460 = vsyncadd [#allocation5], 4294966784 }
  0x36   :  { %2461 = dma.done.wait [#allocation8], 32768  }
  0x37   :  { %2462 = vsyncadd [#allocation8], 4294934528  ;;  %v2472_v0 = vmov 0.0   ;;  %vm158_vm0 = vcmask 523264   ;;  %v154_v1 = vld [vmem:[#allocation4] sm:$0xff]  ;;  %v155_v2 = vld [vmem:[#allocation4 + $0x8] sm:$0xff]  ;;  %v59_v56 = vlaneseq }
  0x38   :  { %148 = vst [vmem:[#allocation2] sm:$0xff] %v2472_v0  ;;  %149 = vst [vmem:[#allocation2 + $0x8] sm:$0xff] %v2472_v0  ;;  %321 = vmatprep.mubr.f32.mxu0 %v2472_v0  ;;  %v156_v3 = vld [vmem:[#allocation4 + $0x10] sm:$0xff]  ;;  %s2473_s2 = smov 64   ;;  %v157_v4 = vld [vmem:[#allocation4 + $0x18] sm:$0xff]  ;;  %v2474_v57 = vmov 0.0|0.0  }
  0x39   :  { %150 = vst [vmem:[#allocation2 + $0x10] sm:$0x3f] %v2472_v0  ;;  %151 = vst [vmem:[#allocation2 + $0x18] sm:$0xff] %v2472_v0  ;;  %167 = vrot.lane.b32.xlu0 %v154_v1, %s2473_s2  ;;  %171 = vrot.lane.b32.xlu1 %v156_v3, %s2473_s2  ;;  %v226_v5 = vld [vmem:[#allocation7 + $0x108] sm:$0xff]  ;;  %v228_v6 = vld [vmem:[#allocation7 + $0x118] sm:$0xff]  ;;  %v2561_v58 = vshrl.u32 %v59_v56, 7 }
  0x3a   :  { %152 = vst [vmem:[#allocation2 + $0x20] sm:$0xff] %v2472_v0  ;;  %153 = vst [vmem:[#allocation2 + $0x28] sm:$0x3f] %v2472_v0  ;;  %v2026_v7 = vpack.c.bf16 %v228_v6, %v226_v5  ;;  %v225_v8 = vld [vmem:[#allocation7 + $0x100] sm:$0xff]  ;;  %v227_v9 = vld [vmem:[#allocation7 + $0x110] sm:$0xff]  ;;  %2154 = vmatprep.subr.bf16.mxu1 %v2474_v57  ;;  %v77_v59 = vand.u32 127, %v59_v56 }
  0x3b   :  { %850 = vst [vmem:[#allocation3] sm:$0xff] %v2472_v0  ;;  %851 = vst [vmem:[#allocation3 + $0x8] sm:$0xff] %v2472_v0  ;;  %v230_v10 = vld [vmem:[#allocation7 + $0x128] sm:$0xff]  ;;  %v2028_v11 = vpack.c.bf16 %v227_v9, %v225_v8  ;;  %v232_v12 = vld [vmem:[#allocation7 + $0x138] sm:$0xff]  ;;  %v61_v60 = vadd.s32 8, %v2561_v58  ;;  %v78_v61 = vand.u32 7, %v2561_v58 }
  0x3c   :  { %854 = vst [vmem:[#allocation3 + $0x20] sm:$0x3f] %v2472_v0  ;;  %855 = vst [vmem:[#allocation3 + $0x28] sm:$0x3f] %v2472_v0  ;;  %v229_v13 = vld [vmem:[#allocation7 + $0x120] sm:$0xff]  ;;  %v231_v14 = vld [vmem:[#allocation7 + $0x130] sm:$0xff]  ;;  %2027 = vmatprep.subr.bf16.mxu0 %v2026_v7  ;;  %v2030_v15 = vpack.c.bf16 %v232_v12, %v230_v10 }
  0x3d   :  { %856 = vst [vmem:[#allocation3 + $0x30] sm:$0xff] %v2472_v0  ;;  %857 = vst [vmem:[#allocation3 + $0x38] sm:$0xff] %v2472_v0  ;;  %v234_v16 = vld [vmem:[#allocation7 + $0x148] sm:$0xff]  ;;  %v236_v17 = vld [vmem:[#allocation7 + $0x158] sm:$0xff]  ;;  %169 = vrot.lane.b32.xlu0 %v155_v2, %s2473_s2  ;;  %173 = vrot.lane.b32.xlu1 %v157_v4, %s2473_s2  ;;  %v2032_v18 = vpack.c.bf16 %v231_v14, %v229_v13  ;;  %v2565_v62 = vand.u32 7, %v77_v59  ;;  %v79_v63 = vand.u32 7, %v61_v60 }
  0x3e   :  { %860 = vst [vmem:[#allocation3 + $0x50] sm:$0x3f] %v2472_v0  ;;  %861 = vst [vmem:[#allocation3 + $0x58] sm:$0x3f] %v2472_v0  ;;  %2029 = vmatpush1.bf16.msra.mxu0 %v2028_v11  ;;  %v2034_v19 = vpack.c.bf16 %v236_v17, %v234_v16  ;;  %v233_v20 = vld [vmem:[#allocation7 + $0x140] sm:$0xff]  ;;  %v235_v21 = vld [vmem:[#allocation7 + $0x150] sm:$0xff] }
  0x3f   :  { %159 = vst.msk [vmem:[#allocation2 + $0x3] sm:$0xff] %vm158_vm0, %v154_v1  ;;  %160 = vst.msk [vmem:[#allocation2 + $0xb] sm:$0xff] %vm158_vm0, %v155_v2  ;;  %2031 = vmatprep.subr.bf16.mxu0 %v2030_v15  ;;  %v238_v22 = vld [vmem:[#allocation7 + $0x168] sm:$0xff]  ;;  %v240_v23 = vld [vmem:[#allocation7 + $0x178] sm:$0xff]  ;;  %v2036_v24 = vpack.c.bf16 %v235_v21, %v233_v20  ;;  %vm2568_vm1 = vcmp.eq.s32.totalorder %v78_v61, %v2565_v62  ;;  %vm2573_vm2 = vcmp.eq.s32.totalorder %v79_v63, %v2565_v62  ;;  %vm179_vm3 = vcmask 1048064   ;;  %s2477_s11 = smov [#allocation10]  }
  0x40   :  { %161 = vst.msk [vmem:[#allocation2 + $0x1b] sm:$0xff] %vm158_vm0, %v156_v3  ;;  %162 = vst.msk [vmem:[#allocation2 + $0x23] sm:$0xff] %vm158_vm0, %v157_v4  ;;  %v2038_v25 = vpack.c.bf16 %v240_v23, %v238_v22  ;;  %v237_v26 = vld [vmem:[#allocation7 + $0x160] sm:$0xff]  ;;  %v239_v27 = vld [vmem:[#allocation7 + $0x170] sm:$0xff]  ;;  %v2475_v3 = vmov 1.0|1.0  }
  0x41   :  { %v242_v28 = vld [vmem:[#allocation7 + $0x188] sm:$0xff]  ;;  %v244_v29 = vld [vmem:[#allocation7 + $0x198] sm:$0xff]  ;;  %v2040_v30 = vpack.c.bf16 %v239_v27, %v237_v26  ;;  %v241_v32 = vld [vmem:[#allocation7 + $0x180] sm:$0xff]  ;;  %s1680_s12 = sshll.u32 %s2477_s11, 4  ;;  %s1681_s12 = int_to_ptr.vmem [resolvable:$true] %s1680_s12 }
  0x42   :  { %2033 = vmatpush1.bf16.msra.mxu0 %v2032_v18  ;;  %v2042_v31 = vpack.c.bf16 %v244_v29, %v242_v28  ;;  %v243_v33 = vld [vmem:[#allocation7 + $0x190] sm:$0xff]  ;;  %v246_v34 = vld [vmem:[#allocation7 + $0x1a8] sm:$0xff]  ;;  %v248_v35 = vld [vmem:[#allocation7 + $0x1b8] sm:$0xff]  ;;  %p2442_p11 = scmp.lt.s32.totalorder %s1681_s12, %s1681_s12 }
  0x43   :  { %2035 = vmatprep.subr.bf16.mxu0 %v2034_v19  ;;  %v2044_v36 = vpack.c.bf16 %v243_v33, %v241_v32  ;;  %v2046_v37 = vpack.c.bf16 %v248_v35, %v246_v34  ;;  %v245_v38 = vld [vmem:[#allocation7 + $0x1a0] sm:$0xff]  ;;  %v247_v39 = vld [vmem:[#allocation7 + $0x1b0] sm:$0xff]  ;;  %v250_v40 = vld [vmem:[#allocation7 + $0x1c8] sm:$0xff] }
  0x44   :  { %v252_v41 = vld [vmem:[#allocation7 + $0x1d8] sm:$0xff]  ;;  %v2048_v42 = vpack.c.bf16 %v247_v39, %v245_v38  ;;  %v249_v44 = vld [vmem:[#allocation7 + $0x1c0] sm:$0xff]  ;;  %v251_v45 = vld [vmem:[#allocation7 + $0x1d0] sm:$0xff] }
  0x45   :  { %v2050_v43 = vpack.c.bf16 %v252_v41, %v250_v40  ;;  %v254_v46 = vld [vmem:[#allocation7 + $0x1e8] sm:$0xff]  ;;  %v256_v47 = vld [vmem:[#allocation7 + $0x1f8] sm:$0xff]  ;;  %v2052_v48 = vpack.c.bf16 %v251_v45, %v249_v44  ;;  %v253_v50 = vld [vmem:[#allocation7 + $0x1e0] sm:$0xff] }
  0x46   :  { %2037 = vmatpush1.bf16.msra.mxu0 %v2036_v24  ;;  %v2054_v49 = vpack.c.bf16 %v256_v47, %v254_v46  ;;  %v255_v51 = vld [vmem:[#allocation7 + $0x1f0] sm:$0xff]  ;;  %v189_v52 = vld [vmem:[#allocation7 + $0x8] sm:$0xff]  ;;  %v191_v53 = vld [vmem:[#allocation7 + $0x18] sm:$0xff] }
  0x47   :  { %2039 = vmatprep.subr.bf16.mxu0 %v2038_v25  ;;  %v2056_v54 = vpack.c.bf16 %v255_v51, %v253_v50  ;;  %v2058_v55 = vpack.c.bf16 %v191_v53, %v189_v52  ;;  %vm2964_vm4 = vmpackc.low %vm2573_vm2, %vm2568_vm1  ;;  %v188_v6 = vld [vmem:[#allocation7] sm:$0xff]  ;;  %v190_v7 = vld [vmem:[#allocation7 + $0x10] sm:$0xff] }
  0x48   :  { %2156 = vmatpush3.bf16.msk.msra.mxu1 %vm2964_vm4, %v2475_v3  ;;  %v193_v9 = vld [vmem:[#allocation7 + $0x28] sm:$0xff]  ;;  %v195_v10 = vld [vmem:[#allocation7 + $0x38] sm:$0xff]  ;;  %v2060_v12 = vpack.c.bf16 %v190_v7, %v188_v6  ;;  %v192_v14 = vld [vmem:[#allocation7 + $0x20] sm:$0xff]  ;;  %vm2967_vm4 = vmmov 0  }
  0x49   :  { %2157 = vmatprep.subr.bf16.mxu1 %v2474_v57  ;;  %v2062_v13 = vpack.c.bf16 %v195_v10, %v193_v9  ;;  %v194_v15 = vld [vmem:[#allocation7 + $0x30] sm:$0xff]  ;;  %v197_v17 = vld [vmem:[#allocation7 + $0x48] sm:$0xff]  ;;  %v199_v18 = vld [vmem:[#allocation7 + $0x58] sm:$0xff]  ;;  %1988 = vmatprep.mubr.msk.f32.mxu1 %vm2967_vm4, %v2472_v0 }
  0x4a   :  { %2041 = vmatpush1.bf16.msra.mxu0 %v2040_v30  ;;  %v2064_v19 = vpack.c.bf16 %v194_v15, %v192_v14  ;;  %v2066_v20 = vpack.c.bf16 %v199_v18, %v197_v17  ;;  %v196_v21 = vld [vmem:[#allocation7 + $0x40] sm:$0xff]  ;;  %v198_v22 = vld [vmem:[#allocation7 + $0x50] sm:$0xff]  ;;  %v201_v23 = vld [vmem:[#allocation7 + $0x68] sm:$0xff] }
  0x4b   :  { %2043 = vmatprep.subr.bf16.mxu0 %v2042_v31  ;;  %v203_v24 = vld [vmem:[#allocation7 + $0x78] sm:$0xff]  ;;  %v2068_v26 = vpack.c.bf16 %v198_v22, %v196_v21  ;;  %v200_v29 = vld [vmem:[#allocation7 + $0x60] sm:$0xff]  ;;  %v202_v30 = vld [vmem:[#allocation7 + $0x70] sm:$0xff] }
  0x4c   :  { %v2070_v28 = vpack.c.bf16 %v203_v24, %v201_v23  ;;  %v205_v31 = vld [vmem:[#allocation7 + $0x88] sm:$0xff]  ;;  %v207_v32 = vld [vmem:[#allocation7 + $0x98] sm:$0xff]  ;;  %v2072_v33 = vpack.c.bf16 %v202_v30, %v200_v29  ;;  %v440_v63 = vld [vmem:[#allocation7 + $0x200] sm:$0xff] }
  0x4d   :  { %v2074_v35 = vpack.c.bf16 %v207_v32, %v205_v31  ;;  %v209_v38 = vld [vmem:[#allocation7 + $0xa8] sm:$0xff]  ;;  %v211_v39 = vld [vmem:[#allocation7 + $0xb8] sm:$0xff]  ;;  %v444_v9 = vld [vmem:[#allocation7 + $0x220] sm:$0xff] }
  0x4e   :  { %2045 = vmatpush1.bf16.msra.mxu0 %v2044_v36  ;;  %v204_v36 = vld [vmem:[#allocation7 + $0x80] sm:$0xff]  ;;  %v2078_v41 = vpack.c.bf16 %v211_v39, %v209_v38  ;;  %v213_v44 = vld [vmem:[#allocation7 + $0xc8] sm:$0xff]  ;;  %v215_v45 = vld [vmem:[#allocation7 + $0xd8] sm:$0xff] }
  0x4f   :  { %2047 = vmatprep.subr.bf16.mxu0 %v2046_v37  ;;  %v206_v37 = vld [vmem:[#allocation7 + $0x90] sm:$0xff]  ;;  %v2082_v47 = vpack.c.bf16 %v215_v45, %v213_v44  ;;  %v217_v50 = vld [vmem:[#allocation7 + $0xe8] sm:$0xff]  ;;  %v219_v51 = vld [vmem:[#allocation7 + $0xf8] sm:$0xff] }
  0x50   :  { %v2076_v40 = vpack.c.bf16 %v206_v37, %v204_v36  ;;  %v2086_v53 = vpack.c.bf16 %v219_v51, %v217_v50  ;;  %v441_v56 = vld [vmem:[#allocation7 + $0x208] sm:$0xff]  ;;  %v443_v59 = vld [vmem:[#allocation7 + $0x218] sm:$0xff]  ;;  %v446_v10 = vld [vmem:[#allocation7 + $0x230] sm:$0xff] }
  0x51   :  { %v2090_v61 = vpack.c.bf16 %v443_v59, %v441_v56  ;;  %v447_v6 = vld [vmem:[#allocation7 + $0x238] sm:$0xff]  ;;  %v2096_v14 = vpack.c.bf16 %v446_v10, %v444_v9  ;;  %v450_v17 = vld [vmem:[#allocation7 + $0x250] sm:$0xff]  ;;  %v452_v23 = vld [vmem:[#allocation7 + $0x260] sm:$0xff] }
  0x52   :  { %2049 = vmatpush1.bf16.msra.mxu0 %v2048_v42  ;;  %v208_v42 = vld [vmem:[#allocation7 + $0xa0] sm:$0xff]  ;;  %v454_v24 = vld [vmem:[#allocation7 + $0x270] sm:$0xff]  ;;  %v465_v39 = vld [vmem:[#allocation7 + $0x2c8] sm:$0xff] }
  0x53   :  { %2051 = vmatprep.subr.bf16.mxu0 %v2050_v43  ;;  %v210_v43 = vld [vmem:[#allocation7 + $0xb0] sm:$0xff]  ;;  %v456_v30 = vld [vmem:[#allocation7 + $0x280] sm:$0xff]  ;;  %v469_v45 = vld [vmem:[#allocation7 + $0x2e8] sm:$0xff] }
  0x54   :  { %v2080_v46 = vpack.c.bf16 %v210_v43, %v208_v42  ;;  %v458_v31 = vld [vmem:[#allocation7 + $0x290] sm:$0xff]  ;;  %v460_v37 = vld [vmem:[#allocation7 + $0x2a0] sm:$0xff]  ;;  %v575_v51 = vld [vmem:[#allocation7 + $0x308] sm:$0xff] }
  0x55   :  { %v462_v38 = vld [vmem:[#allocation7 + $0x2b0] sm:$0xff]  ;;  %v464_v43 = vld [vmem:[#allocation7 + $0x2c0] sm:$0xff]  ;;  %v579_v59 = vld [vmem:[#allocation7 + $0x328] sm:$0xff] }
  0x56   :  { %2053 = vmatpush1.bf16.msra.mxu0 %v2052_v48  ;;  %v212_v48 = vld [vmem:[#allocation7 + $0xc0] sm:$0xff]  ;;  %v466_v44 = vld [vmem:[#allocation7 + $0x2d0] sm:$0xff] }
  0x57   :  { %2055 = vmatprep.subr.bf16.mxu0 %v2054_v49  ;;  %v214_v49 = vld [vmem:[#allocation7 + $0xd0] sm:$0xff] }
  0x58   :  { %v2084_v52 = vpack.c.bf16 %v214_v49, %v212_v48  ;;  %v468_v49 = vld [vmem:[#allocation7 + $0x2e0] sm:$0xff]  ;;  %v470_v50 = vld [vmem:[#allocation7 + $0x2f0] sm:$0xff] }
  0x59   :  { %v576_v56 = vld [vmem:[#allocation7 + $0x310] sm:$0xff] }
  0x5a   :  { %2057 = vmatpush1.bf16.msra.mxu0 %v2056_v54  ;;  %v216_v54 = vld [vmem:[#allocation7 + $0xe0] sm:$0xff] }
  0x5b   :  { %2059 = vmatprep.subr.bf16.mxu0 %v2058_v55  ;;  %v218_v55 = vld [vmem:[#allocation7 + $0xf0] sm:$0xff] }
  0x5c   :  { %v2088_v60 = vpack.c.bf16 %v218_v55, %v216_v54  ;;  %v574_v55 = vld [vmem:[#allocation7 + $0x300] sm:$0xff] }
  0xab   :  { %v168_v4 = vpop.permute.xlu0 %167  ;;  %v172_v5 = vpop.permute.xlu1 %171 }
  0xac   :  { %180 = vst.msk [vmem:[#allocation2 + $0x2] sm:$0xff] %vm179_vm3, %v168_v4  ;;  %182 = vst.msk [vmem:[#allocation2 + $0x1a] sm:$0xff] %vm179_vm3, %v172_v5  ;;  %v442_v4 = vld [vmem:[#allocation7 + $0x210] sm:$0xff]  ;;  %v445_v5 = vld [vmem:[#allocation7 + $0x228] sm:$0xff] }
  0xad   :  { %v2092_v7 = vpack.c.bf16 %v442_v4, %v440_v63  ;;  %v578_v4 = vld [vmem:[#allocation7 + $0x320] sm:$0xff] }
  0xaf   :  { %v170_v8 = vpop.permute.xlu0 %169  ;;  %v174_v11 = vpop.permute.xlu1 %173 }
  0xb0   :  { %181 = vst.msk [vmem:[#allocation2 + $0xa] sm:$0xff] %vm179_vm3, %v170_v8  ;;  %183 = vst.msk [vmem:[#allocation2 + $0x22] sm:$0xff] %vm179_vm3, %v174_v11  ;;  %v2094_v8 = vpack.c.bf16 %v447_v6, %v445_v5  ;;  %v580_v5 = vld [vmem:[#allocation7 + $0x330] sm:$0xff] }
  0xb1   :  { %v2128_v9 = vpack.c.bf16 %v580_v5, %v578_v4 }
  0xb3   :  { %v220_v16 = vld [vmem:[#allocation2 + $0x2] sm:$0xff]  ;;  %v222_v27 = vld [vmem:[#allocation2 + $0x1a] sm:$0xff] }
  0xb4   :  { %322 = vmatmul.mubr.f32.vlgmr.msra.gmra.mrb[0].mxu0 %v220_v16  ;;  %v184_v11 = vld [vmem:[#allocation2] sm:$0xff]  ;;  %v448_v16 = vld [vmem:[#allocation7 + $0x240] sm:$0xff] }
  0xb5   :  { %2061 = vmatpush1.bf16.msra.mxu0 %v2060_v12  ;;  %327 = vmatprep.mubr.f32.mxu0 %v2472_v0  ;;  %v449_v12 = vld [vmem:[#allocation7 + $0x248] sm:$0xff]  ;;  %v2100_v21 = vpack.c.bf16 %v450_v17, %v448_v16 }
  0xb6   :  { %2063 = vmatprep.subr.bf16.mxu0 %v2062_v13  ;;  %v451_v13 = vld [vmem:[#allocation7 + $0x258] sm:$0xff] }
  0xb7   :  { %v221_v25 = vld [vmem:[#allocation2 + $0xa] sm:$0xff]  ;;  %v223_v34 = vld [vmem:[#allocation2 + $0x22] sm:$0xff]  ;;  %v2098_v15 = vpack.c.bf16 %v451_v13, %v449_v12 }
  0xb8   :  { %328 = vmatmul.mubr.f32.gmra.mrb[2].mxu0 %v221_v25  ;;  %v185_v18 = vld [vmem:[#allocation2 + $0x8] sm:$0xff]  ;;  %v186_v25 = vld [vmem:[#allocation2 + $0x18] sm:$0xff]  ;;  %v187_v32 = vld [vmem:[#allocation2 + $0x20] sm:$0xff] }
  0xb9   :  { %2065 = vmatpush1.bf16.msra.mxu0 %v2064_v19  ;;  %333 = vmatprep.mubr.f32.mxu0 %v2472_v0  ;;  %v453_v19 = vld [vmem:[#allocation7 + $0x268] sm:$0xff]  ;;  %v435_v6 = vld [vmem:[#allocation2 + $0x4] sm:$0xff]  ;;  %v436_v13 = vld [vmem:[#allocation2 + $0xc] sm:$0xff] }
  0xba   :  { %2067 = vmatprep.subr.bf16.mxu0 %v2066_v20  ;;  %v455_v20 = vld [vmem:[#allocation7 + $0x278] sm:$0xff]  ;;  %v584_v12 = vld [vmem:[#allocation7 + $0x350] sm:$0xff] }
  0xbb   :  { %v2102_v22 = vpack.c.bf16 %v455_v20, %v453_v19  ;;  %v588_v19 = vld [vmem:[#allocation7 + $0x370] sm:$0xff] }
  0xbc   :  { %334 = vmatmul.mubr.f32.gmra.mrb[4].mxu0 %v222_v27  ;;  %v459_v27 = vld [vmem:[#allocation7 + $0x298] sm:$0xff]  ;;  %v437_v20 = vld [vmem:[#allocation2 + $0x1c] sm:$0xff] }
  0xbd   :  { %2069 = vmatpush1.bf16.msra.mxu0 %v2068_v26  ;;  %339 = vmatprep.mubr.f32.mxu0 %v2472_v0  ;;  %v457_v26 = vld [vmem:[#allocation7 + $0x288] sm:$0xff] }
  0xbe   :  { %2071 = vmatprep.subr.bf16.mxu0 %v2070_v28  ;;  %v2104_v28 = vpack.c.bf16 %v454_v24, %v452_v23  ;;  %v2106_v29 = vpack.c.bf16 %v459_v27, %v457_v26  ;;  %v592_v26 = vld [vmem:[#allocation7 + $0x390] sm:$0xff] }
  0xbf   :  { %v438_v27 = vld [vmem:[#allocation2 + $0x24] sm:$0xff] }
  0xc0   :  { %340 = vmatmul.mubr.f32.gmra.mrb[6].mxu0 %v223_v34  ;;  %v463_v34 = vld [vmem:[#allocation7 + $0x2b8] sm:$0xff] }
  0xc1   :  { %2073 = vmatpush1.bf16.msra.mxu0 %v2072_v33  ;;  %410 = vmatprep.mubr.f32.mxu0 %v2472_v0  ;;  %v461_v33 = vld [vmem:[#allocation7 + $0x2a8] sm:$0xff] }
  0xc2   :  { %2075 = vmatprep.subr.bf16.mxu0 %v2074_v35  ;;  %v2108_v35 = vpack.c.bf16 %v458_v31, %v456_v30  ;;  %v2110_v36 = vpack.c.bf16 %v463_v34, %v461_v33  ;;  %v596_v33 = vld [vmem:[#allocation7 + $0x3b0] sm:$0xff]  ;;  %v599_v34 = vld [vmem:[#allocation7 + $0x3c8] sm:$0xff] }
  0xc5   :  { %2077 = vmatpush1.bf16.msra.mxu0 %v2076_v40  ;;  %v467_v40 = vld [vmem:[#allocation7 + $0x2d8] sm:$0xff] }
  0xc6   :  { %2079 = vmatprep.subr.bf16.mxu0 %v2078_v41  ;;  %v2112_v41 = vpack.c.bf16 %v462_v38, %v460_v37  ;;  %v2114_v42 = vpack.c.bf16 %v467_v40, %v465_v39  ;;  %v598_v38 = vld [vmem:[#allocation7 + $0x3c0] sm:$0xff]  ;;  %v600_v39 = vld [vmem:[#allocation7 + $0x3d0] sm:$0xff]  ;;  %v603_v40 = vld [vmem:[#allocation7 + $0x3e8] sm:$0xff] }
  0xc9   :  { %2081 = vmatpush1.bf16.msra.mxu0 %v2080_v46  ;;  %v471_v46 = vld [vmem:[#allocation7 + $0x2f8] sm:$0xff] }
  0xca   :  { %2083 = vmatprep.subr.bf16.mxu0 %v2082_v47  ;;  %v2116_v47 = vpack.c.bf16 %v466_v44, %v464_v43  ;;  %v2118_v48 = vpack.c.bf16 %v471_v46, %v469_v45  ;;  %v602_v44 = vld [vmem:[#allocation7 + $0x3e0] sm:$0xff]  ;;  %v604_v45 = vld [vmem:[#allocation7 + $0x3f0] sm:$0xff] }
  0xcb   :  { %v2152_v46 = vpack.c.bf16 %v604_v45, %v602_v44 }
  0xcd   :  { %2085 = vmatpush1.bf16.msra.mxu0 %v2084_v52  ;;  %v577_v52 = vld [vmem:[#allocation7 + $0x318] sm:$0xff] }
  0xce   :  { %2087 = vmatprep.subr.bf16.mxu0 %v2086_v53  ;;  %v2120_v53 = vpack.c.bf16 %v470_v50, %v468_v49  ;;  %v2122_v54 = vpack.c.bf16 %v577_v52, %v575_v51  ;;  %v571_v49 = vld [vmem:[#allocation2 + $0x1e] sm:$0xff]  ;;  %v572_v50 = vld [vmem:[#allocation2 + $0x26] sm:$0xff]  ;;  %v62_v51 = vadd.s32 16, %v2561_v58  ;;  %v63_v52 = vadd.s32 24, %v2561_v58 }
  0xd1   :  { %2089 = vmatpush1.bf16.msra.mxu0 %v2088_v60  ;;  %v581_v60 = vld [vmem:[#allocation7 + $0x338] sm:$0xff] }
  0xd2   :  { %2091 = vmatprep.subr.bf16.mxu0 %v2090_v61  ;;  %v2124_v61 = vpack.c.bf16 %v576_v56, %v574_v55  ;;  %v2126_v63 = vpack.c.bf16 %v581_v60, %v579_v59  ;;  %v64_v59 = vadd.s32 32, %v2561_v58  ;;  %v65_v60 = vadd.s32 40, %v2561_v58 }
  0xd4   :  { %411 = vmatmul.mubr.f32.vlgmr.msra.gmra.mrb[0].mxu0 %v184_v11  ;;  %v582_v11 = vld [vmem:[#allocation7 + $0x340] sm:$0xff] }
  0xd5   :  { %2093 = vmatpush1.bf16.msra.mxu0 %v2092_v7  ;;  %416 = vmatprep.mubr.f32.mxu0 %v2472_v0  ;;  %v583_v7 = vld [vmem:[#allocation7 + $0x348] sm:$0xff]  ;;  %v2132_v16 = vpack.c.bf16 %v584_v12, %v582_v11  ;;  %v68_v12 = vadd.s32 64, %v2561_v58 }
  0xd6   :  { %2095 = vmatprep.subr.bf16.mxu0 %v2094_v8  ;;  %v585_v8 = vld [vmem:[#allocation7 + $0x358] sm:$0xff] }
  0xd7   :  { %v2130_v10 = vpack.c.bf16 %v585_v8, %v583_v7  ;;  %v67_v7 = vadd.s32 56, %v2561_v58 }
  0xd8   :  { %417 = vmatmul.mubr.f32.gmra.mrb[2].mxu0 %v185_v18  ;;  %v586_v18 = vld [vmem:[#allocation7 + $0x360] sm:$0xff] }
  0xd9   :  { %2097 = vmatpush1.bf16.msra.mxu0 %v2096_v14  ;;  %422 = vmatprep.mubr.f32.mxu0 %v2472_v0  ;;  %v587_v14 = vld [vmem:[#allocation7 + $0x368] sm:$0xff]  ;;  %v2136_v23 = vpack.c.bf16 %v588_v19, %v586_v18  ;;  %v70_v18 = vadd.s32 80, %v2561_v58  ;;  %v71_v19 = vadd.s32 88, %v2561_v58 }
  0xda   :  { %2099 = vmatprep.subr.bf16.mxu0 %v2098_v15  ;;  %v589_v15 = vld [vmem:[#allocation7 + $0x378] sm:$0xff] }
  0xdb   :  { %v2134_v17 = vpack.c.bf16 %v589_v15, %v587_v14  ;;  %v86_v14 = vand.u32 7, %v68_v12 }
  0xdc   :  { %423 = vmatmul.mubr.f32.gmra.mrb[4].mxu0 %v186_v25  ;;  %v590_v25 = vld [vmem:[#allocation7 + $0x380] sm:$0xff] }
  0xdd   :  { %2101 = vmatpush1.bf16.msra.mxu0 %v2100_v21  ;;  %428 = vmatprep.mubr.f32.mxu0 %v2472_v0  ;;  %v591_v21 = vld [vmem:[#allocation7 + $0x388] sm:$0xff]  ;;  %v2140_v30 = vpack.c.bf16 %v592_v26, %v590_v25  ;;  %vm2679_vm14 = vcmp.eq.s32.totalorder %v86_v14, %v2565_v62  ;;  %v73_v25 = vadd.s32 104, %v2561_v58 }
  0xde   :  { %2103 = vmatprep.subr.bf16.mxu0 %v2102_v22  ;;  %v593_v22 = vld [vmem:[#allocation7 + $0x398] sm:$0xff] }
  0xdf   :  { %v2138_v24 = vpack.c.bf16 %v593_v22, %v591_v21  ;;  %v89_v21 = vand.u32 7, %v71_v19  ;;  %v2993_v22 = vmov 0 }
  0xe0   :  { %429 = vmatmul.mubr.f32.gmra.mrb[6].mxu0 %v187_v32  ;;  %v594_v32 = vld [vmem:[#allocation7 + $0x3a0] sm:$0xff] }
  0xe1   :  { %2105 = vmatpush1.bf16.msra.mxu0 %v2104_v28  ;;  %536 = vmatprep.mubr.f32.mxu0 %v2472_v0  ;;  %v595_v28 = vld [vmem:[#allocation7 + $0x3a8] sm:$0xff] }
  0xe2   :  { %2107 = vmatprep.subr.bf16.mxu0 %v2106_v29  ;;  %v597_v29 = vld [vmem:[#allocation7 + $0x3b8] sm:$0xff] }
  0xe3   :  { %v2142_v31 = vpack.c.bf16 %v597_v29, %v595_v28  ;;  %v74_v28 = vadd.s32 112, %v2561_v58  ;;  %v75_v29 = vadd.s32 120, %v2561_v58 }
  0xe5   :  { %2109 = vmatpush1.bf16.msra.mxu0 %v2108_v35  ;;  %v601_v35 = vld [vmem:[#allocation7 + $0x3d8] sm:$0xff] }
  0xe6   :  { %2111 = vmatprep.subr.bf16.mxu0 %v2110_v36  ;;  %v2144_v36 = vpack.c.bf16 %v596_v33, %v594_v32  ;;  %v2146_v37 = vpack.c.bf16 %v601_v35, %v599_v34  ;;  %v92_v32 = vand.u32 7, %v74_v28  ;;  %v93_v33 = vand.u32 7, %v75_v29  ;;  %v1409_v28 = vld [vmem:[#allocation9 + $0x308] sm:$0xff] }
  0xe7   :  { %v3001_v34 = vmov 0 }
  0xe8   :  { %vm2755_vm4 = vcmp.eq.s32.totalorder %v93_v33, %v2565_v62  ;;  %v1012_v33 = vld [vmem:[#allocation9 + $0x190] sm:$0xff] }
  0xe9   :  { %2113 = vmatpush1.bf16.msra.mxu0 %v2112_v41  ;;  %v605_v41 = vld [vmem:[#allocation7 + $0x3f8] sm:$0xff] }
  0xea   :  { %2115 = vmatprep.subr.bf16.mxu0 %v2114_v42  ;;  %v2148_v42 = vpack.c.bf16 %v600_v39, %v598_v38  ;;  %v2150_v43 = vpack.c.bf16 %v605_v41, %v603_v40 }
  0xed   :  { %2117 = vmatpush1.bf16.msra.mxu0 %v2116_v47  ;;  %v569_v47 = vld [vmem:[#allocation2 + $0x6] sm:$0xff] }
  0xee   :  { %2119 = vmatprep.subr.bf16.mxu0 %v2118_v48  ;;  %v570_v48 = vld [vmem:[#allocation2 + $0xe] sm:$0xff] }
  0xf1   :  { %2121 = vmatpush1.bf16.msra.mxu0 %v2120_v53  ;;  %v80_v53 = vand.u32 7, %v62_v51 }
  0xf2   :  { %2123 = vmatprep.subr.bf16.mxu0 %v2122_v54  ;;  %v81_v54 = vand.u32 7, %v63_v52 }
  0xf3   :  { %vm2610_vm5 = vcmp.eq.s32.totalorder %v80_v53, %v2565_v62 }
  0xf4   :  { %537 = vmatmul.mubr.f32.vlgmr.msra.gmra.mrb[0].mxu0 %v435_v6  ;;  %vm2615_vm6 = vcmp.eq.s32.totalorder %v81_v54, %v2565_v62  ;;  %v66_v6 = vadd.s32 48, %v2561_v58 }
  0xf5   :  { %2125 = vmatpush1.bf16.msra.mxu0 %v2124_v61  ;;  %542 = vmatprep.mubr.f32.mxu0 %v2472_v0  ;;  %vm2963_vm7 = vmpackc.low %vm2615_vm6, %vm2610_vm5  ;;  %v82_v61 = vand.u32 7, %v64_v59 }
  0xf6   :  { %2127 = vmatprep.subr.bf16.mxu0 %v2126_v63  ;;  %2159 = vmatpush3.bf16.msk.msra.mxu1 %vm2963_vm7, %v2475_v3  ;;  %v83_v63 = vand.u32 7, %v65_v60  ;;  %v84_v8 = vand.u32 7, %v66_v6 }
  0xf7   :  { %2160 = vmatprep.subr.bf16.mxu1 %v2474_v57  ;;  %vm2633_vm8 = vcmp.eq.s32.totalorder %v82_v61, %v2565_v62 }
  0xf8   :  { %543 = vmatmul.mubr.f32.gmra.mrb[2].mxu0 %v436_v13  ;;  %vm2638_vm9 = vcmp.eq.s32.totalorder %v83_v63, %v2565_v62  ;;  %vm2656_vm11 = vcmp.eq.s32.totalorder %v84_v8, %v2565_v62  ;;  %v69_v13 = vadd.s32 72, %v2561_v58 }
  0xf9   :  { %2129 = vmatpush1.bf16.msra.mxu0 %v2128_v9  ;;  %548 = vmatprep.mubr.f32.mxu0 %v2472_v0  ;;  %vm2962_vm10 = vmpackc.low %vm2638_vm9, %vm2633_vm8  ;;  %v85_v9 = vand.u32 7, %v67_v7 }
  0xfa   :  { %2131 = vmatprep.subr.bf16.mxu0 %v2130_v10  ;;  %2162 = vmatpush3.bf16.msk.msra.mxu1 %vm2962_vm10, %v2475_v3  ;;  %v87_v15 = vand.u32 7, %v69_v13 }
  0xfb   :  { %2163 = vmatprep.subr.bf16.mxu1 %v2474_v57  ;;  %vm2661_vm12 = vcmp.eq.s32.totalorder %v85_v9, %v2565_v62 }
  0xfc   :  { %549 = vmatmul.mubr.f32.gmra.mrb[4].mxu0 %v437_v20  ;;  %vm2960_vm13 = vmpackc.low %vm2661_vm12, %vm2656_vm11  ;;  %vm2684_vm15 = vcmp.eq.s32.totalorder %v87_v15, %v2565_v62  ;;  %v88_v20 = vand.u32 7, %v70_v18  ;;  %v1010_v15 = vld [vmem:[#allocation9 + $0x180] sm:$0xff]  ;;  %v1011_v18 = vld [vmem:[#allocation9 + $0x188] sm:$0xff] }
  0xfd   :  { %2133 = vmatpush1.bf16.msra.mxu0 %v2132_v16  ;;  %554 = vmatprep.mubr.f32.mxu0 %v2472_v0  ;;  %vm2961_vm0 = vmpackc.low %vm2684_vm15, %vm2679_vm14  ;;  %v2178_v19 = vpack.c.bf16 %v1011_v18, %v1010_v15  ;;  %v1016_v15 = vld [vmem:[#allocation9 + $0x1b0] sm:$0xff]  ;;  %v1017_v18 = vld [vmem:[#allocation9 + $0x1b8] sm:$0xff] }
  0xfe   :  { %2135 = vmatprep.subr.bf16.mxu0 %v2134_v17  ;;  %2165 = vmatpush3.bf16.msk.msra.mxu1 %vm2960_vm13, %v2475_v3  ;;  %vm2702_vm3 = vcmp.eq.s32.totalorder %v88_v20, %v2565_v62  ;;  %vm2707_vm13 = vcmp.eq.s32.totalorder %v89_v21, %v2565_v62  ;;  %v994_v20 = vld [vmem:[#allocation9 + $0x100] sm:$0xff]  ;;  %v995_v21 = vld [vmem:[#allocation9 + $0x108] sm:$0xff] }
  0xff   :  { %2166 = vmatprep.subr.bf16.mxu1 %v2474_v57  ;;  %v2994_v22 = vsel %vm2702_vm3, 4294967295, %v2993_v22 }
 0x100   :  { %555 = vmatmul.mubr.f32.gmra.mrb[6].mxu0 %v438_v27  ;;  %v91_v27 = vand.u32 7, %v73_v25  ;;  %v2180_v25 = vpack.c.bf16 %v995_v21, %v994_v20  ;;  %v1000_v20 = vld [vmem:[#allocation9 + $0x130] sm:$0xff]  ;;  %v1001_v21 = vld [vmem:[#allocation9 + $0x138] sm:$0xff] }
 0x101   :  { %2137 = vmatpush1.bf16.msra.mxu0 %v2136_v23  ;;  %670 = vmatprep.mubr.f32.mxu0 %v2472_v0  ;;  %v2995_v23 = vmov 0 }
 0x102   :  { %2139 = vmatprep.subr.bf16.mxu0 %v2138_v24  ;;  %2168 = vmatpush3.bf16.msk.msra.mxu1 %vm2961_vm0, %v2475_v3  ;;  %v2996_v23 = vsel %vm2707_vm13, 4294967295, %v2995_v23  ;;  %v72_v24 = vadd.s32 96, %v2561_v58  ;;  %vm2965_vm0 = vmpackc.low %vm2707_vm13, %vm2702_vm3  ;;  %vm2732_vm7 = vcmp.eq.s32.totalorder %v91_v27, %v2565_v62  ;;  %vm2750_vm3 = vcmp.eq.s32.totalorder %v92_v32, %v2565_v62  ;;  %v1408_v27 = vld [vmem:[#allocation9 + $0x300] sm:$0xff] }
 0x103   :  { %2169 = vmatprep.subr.bf16.mxu1 %v2474_v57  ;;  %v3002_v34 = vsel %vm2750_vm3, 4294967295, %v3001_v34  ;;  %vm2969_vm13 = vmpackc.low %vm2755_vm4, %vm2750_vm3  ;;  %v2276_v32 = vpack.c.bf16 %v1409_v28, %v1408_v27  ;;  %v1414_v27 = vld [vmem:[#allocation9 + $0x330] sm:$0xff]  ;;  %v1415_v28 = vld [vmem:[#allocation9 + $0x338] sm:$0xff]  ;;  %vm964_vm3 = vcmask 1045504  }
 0x104   :  { %v90_v26 = vand.u32 7, %v72_v24  ;;  %v1424_v24 = vld [vmem:[#allocation9 + $0x380] sm:$0xff] }
 0x105   :  { %2141 = vmatpush1.bf16.msra.mxu0 %v2140_v30 }
 0x106   :  { %2143 = vmatprep.subr.bf16.mxu0 %v2142_v31  ;;  %2171 = vmatpush3.bf16.msk.msra.mxu1 %vm2965_vm0, %v2475_v3  ;;  %vm2727_vm10 = vcmp.eq.s32.totalorder %v90_v26, %v2565_v62  ;;  %v1425_v26 = vld [vmem:[#allocation9 + $0x388] sm:$0xff] }
 0x107   :  { %2172 = vmatprep.subr.bf16.mxu1 %v2474_v57  ;;  %vm2971_vm0 = vmpackc.low %vm2732_vm7, %vm2727_vm10  ;;  %v2274_v29 = vpack.c.bf16 %v1425_v26, %v1424_v24  ;;  %v1430_v24 = vld [vmem:[#allocation9 + $0x3b0] sm:$0xff]  ;;  %v1431_v26 = vld [vmem:[#allocation9 + $0x3b8] sm:$0xff] }
 0x109   :  { %2145 = vmatpush1.bf16.msra.mxu0 %v2144_v36 }
 0x10a   :  { %2147 = vmatprep.subr.bf16.mxu0 %v2146_v37  ;;  %2174 = vmatpush3.bf16.msk.msra.mxu1 %vm2971_vm0, %v2475_v3  ;;  %vm885_vm0 = vcmask 1041408  }
 0x10b   :  { %2175 = vmatprep.subr.bf16.mxu1 %v2474_v57 }
 0x10d   :  { %2149 = vmatpush1.bf16.msra.mxu0 %v2148_v42 }
 0x10e   :  { %2151 = vmatprep.subr.bf16.mxu0 %v2150_v43  ;;  %2177 = vmatpush3.bf16.msk.msra.mxu1 %vm2969_vm13, %v2475_v3  ;;  %vm2970_vm13 = vcmask 1040384  }
 0x10f   :  { %2179 = vmatprep.subr.bf16.mxu1 %v2178_v19  ;;  %v2190_v19 = vpack.c.bf16 %v1017_v18, %v1016_v15  ;;  %v1022_v15 = vld [vmem:[#allocation9 + $0x1e0] sm:$0xff]  ;;  %v1023_v18 = vld [vmem:[#allocation9 + $0x1e8] sm:$0xff] }
 0x111   :  { %2153 = vmatpush1.bf16.msra.mxu0 %v2152_v46 }
 0x112   :  { %2275 = vmatprep.subr.bf16.mxu0 %v2274_v29  ;;  %v2286_v29 = vpack.c.bf16 %v1431_v26, %v1430_v24  ;;  %v1436_v24 = vld [vmem:[#allocation9 + $0x3e0] sm:$0xff]  ;;  %v1437_v26 = vld [vmem:[#allocation9 + $0x3e8] sm:$0xff] }
 0x114   :  { %671 = vmatmul.mubr.f32.vlgmr.msra.gmra.mrb[0].mxu0 %v569_v47 }
 0x115   :  { %676 = vmatprep.mubr.f32.mxu0 %v2472_v0  ;;  %2277 = vmatpush3.bf16.msra.mxu0 %v2276_v32  ;;  %v2288_v32 = vpack.c.bf16 %v1415_v28, %v1414_v27  ;;  %v1420_v27 = vld [vmem:[#allocation9 + $0x360] sm:$0xff]  ;;  %v1421_v28 = vld [vmem:[#allocation9 + $0x368] sm:$0xff] }
 0x118   :  { %677 = vmatmul.mubr.f32.gmra.mrb[2].mxu0 %v570_v48 }
 0x119   :  { %682 = vmatprep.mubr.f32.mxu0 %v2472_v0 }
 0x11c   :  { %683 = vmatmul.mubr.f32.gmra.mrb[4].mxu0 %v571_v49 }
 0x11d   :  { %688 = vmatprep.mubr.f32.mxu0 %v2472_v0 }
 0x120   :  { %689 = vmatmul.mubr.f32.gmra.mrb[6].mxu0 %v572_v50 }
 0x1e7   :  { %v2769_v36 = vpop.f32.mrb[0].mxu0 }
 0x1e8   :  { %v2771_v37 = vpop.f32.mrb[1].mxu0  ;;  %v712_v38 = vmul.f32 %v2769_v36, %v2769_v36 }
 0x1eb   :  { %v2773_v62 = vpop.f32.mrb[2].mxu0 }
 0x1ec   :  { %v703_v39 = vadd.f32 %v2773_v62, %v2769_v36  ;;  %v713_v40 = vmul.f32 %v2773_v62, %v2773_v62  ;;  %v2781_v41 = vpop.f32.mrb[3].mxu0 }
 0x1ee   :  { %v716_v42 = vadd.f32 %v713_v40, %v712_v38  ;;  %v1013_v38 = vld [vmem:[#allocation9 + $0x198] sm:$0xff]  ;;  %v996_v40 = vld [vmem:[#allocation9 + $0x110] sm:$0xff] }
 0x1ef   :  { %v2783_v43 = vpop.f32.mrb[4].mxu0 }
 0x1f0   :  { %v704_v44 = vadd.f32 %v703_v39, %v2783_v43  ;;  %v714_v45 = vmul.f32 %v2783_v43, %v2783_v43  ;;  %v2788_v46 = vpop.f32.mrb[5].mxu0  ;;  %v2182_v39 = vpack.c.bf16 %v1013_v38, %v1012_v33  ;;  %v1018_v33 = vld [vmem:[#allocation9 + $0x1c0] sm:$0xff]  ;;  %v1019_v38 = vld [vmem:[#allocation9 + $0x1c8] sm:$0xff] }
 0x1f2   :  { %v717_v47 = vadd.f32 %v716_v42, %v714_v45  ;;  %v997_v42 = vld [vmem:[#allocation9 + $0x118] sm:$0xff] }
 0x1f3   :  { %v2790_v48 = vpop.f32.mrb[6].mxu0  ;;  %v2184_v45 = vpack.c.bf16 %v997_v42, %v996_v40  ;;  %v1002_v40 = vld [vmem:[#allocation9 + $0x140] sm:$0xff]  ;;  %v1003_v42 = vld [vmem:[#allocation9 + $0x148] sm:$0xff] }
 0x1f4   :  { %v705_v49 = vadd.f32 %v704_v44, %v2790_v48  ;;  %v715_v50 = vmul.f32 %v2790_v48, %v2790_v48  ;;  %v2795_v51 = vpop.f32.mrb[7].mxu0  ;;  %v1426_v44 = vld [vmem:[#allocation9 + $0x390] sm:$0xff] }
 0x1f6   :  { %v706_v52 = vrot.slane %v705_v49, 4  ;;  %v718_v53 = vadd.f32 %v717_v47, %v715_v50  ;;  %v1427_v47 = vld [vmem:[#allocation9 + $0x398] sm:$0xff] }
 0x1f7   :  { %v1411_v50 = vld [vmem:[#allocation9 + $0x318] sm:$0xff] }
 0x1f8   :  { %v707_v54 = vadd.f32 %v706_v52, %v705_v49  ;;  %v719_v59 = vrot.slane %v718_v53, 4  ;;  %v1410_v49 = vld [vmem:[#allocation9 + $0x310] sm:$0xff]  ;;  %v2278_v52 = vpack.c.bf16 %v1427_v47, %v1426_v44  ;;  %v1432_v44 = vld [vmem:[#allocation9 + $0x3c0] sm:$0xff]  ;;  %v1433_v47 = vld [vmem:[#allocation9 + $0x3c8] sm:$0xff] }
 0x1fa   :  { %v708_v60 = vrot.slane %v707_v54, 2  ;;  %v720_v61 = vadd.f32 %v719_v59, %v718_v53  ;;  %v2280_v53 = vpack.c.bf16 %v1411_v50, %v1410_v49  ;;  %v1015_v59 = vld [vmem:[#allocation9 + $0x1a8] sm:$0xff]  ;;  %2279 = vmatprep.subr.bf16.mxu0 %v2278_v52  ;;  %v1416_v49 = vld [vmem:[#allocation9 + $0x340] sm:$0xff]  ;;  %v2290_v52 = vpack.c.bf16 %v1433_v47, %v1432_v44  ;;  %v1438_v44 = vld [vmem:[#allocation9 + $0x3f0] sm:$0xff] }
 0x1fb   :  { %v1417_v50 = vld [vmem:[#allocation9 + $0x348] sm:$0xff] }
 0x1fc   :  { %v709_v63 = vadd.f32 %v708_v60, %v707_v54  ;;  %v721_v6 = vrot.slane %v720_v61, 2  ;;  %v1014_v54 = vld [vmem:[#allocation9 + $0x1a0] sm:$0xff]  ;;  %2281 = vmatpush3.bf16.msra.mxu0 %v2280_v53  ;;  %v2292_v53 = vpack.c.bf16 %v1417_v50, %v1416_v49  ;;  %v1422_v50 = vld [vmem:[#allocation9 + $0x370] sm:$0xff] }
 0x1fd   :  { %v2186_v60 = vpack.c.bf16 %v1015_v59, %v1014_v54  ;;  %v1020_v54 = vld [vmem:[#allocation9 + $0x1d0] sm:$0xff]  ;;  %v1021_v59 = vld [vmem:[#allocation9 + $0x1d8] sm:$0xff] }
 0x1fe   :  { %v710_v7 = vrot.slane %v709_v63, 1  ;;  %v722_v8 = vadd.f32 %v721_v6, %v720_v61  ;;  %v998_v61 = vld [vmem:[#allocation9 + $0x120] sm:$0xff] }
 0x1ff   :  { %v1428_v6 = vld [vmem:[#allocation9 + $0x3a0] sm:$0xff] }
 0x200   :  { %v723_v9 = vrot.slane %v722_v8, 1  ;;  %v711_v12 = vadd.f32 %v710_v7, %v709_v63  ;;  %v999_v63 = vld [vmem:[#allocation9 + $0x128] sm:$0xff] }
 0x201   :  { %v2188_v7 = vpack.c.bf16 %v999_v63, %v998_v61  ;;  %v1004_v61 = vld [vmem:[#allocation9 + $0x150] sm:$0xff]  ;;  %v1005_v63 = vld [vmem:[#allocation9 + $0x158] sm:$0xff] }
 0x202   :  { %v724_v13 = vadd.f32 %v723_v9, %v722_v8  ;;  %v1429_v8 = vld [vmem:[#allocation9 + $0x3a8] sm:$0xff]  ;;  %v1412_v9 = vld [vmem:[#allocation9 + $0x320] sm:$0xff] }
 0x204   :  { %v726_v14 = vsel %vm2970_vm13, %v711_v12, %v724_v13  ;;  %v1413_v12 = vld [vmem:[#allocation9 + $0x328] sm:$0xff]  ;;  %v2282_v13 = vpack.c.bf16 %v1429_v8, %v1428_v6  ;;  %v1434_v6 = vld [vmem:[#allocation9 + $0x3d0] sm:$0xff]  ;;  %v1435_v8 = vld [vmem:[#allocation9 + $0x3d8] sm:$0xff]  ;;  %vm866_vm13 = vcmask 1042432  }
 0x205   :  { %1989 = vmatmul.mubr.f32.vlgmr.msra.gmra.mrb[0].mxu1 %v726_v14  ;;  %v2284_v14 = vpack.c.bf16 %v1413_v12, %v1412_v9  ;;  %v1418_v9 = vld [vmem:[#allocation9 + $0x350] sm:$0xff]  ;;  %v1419_v12 = vld [vmem:[#allocation9 + $0x358] sm:$0xff] }
 0x206   :  { %2181 = vmatpush3.bf16.msra.mxu1 %v2180_v25  ;;  %2283 = vmatprep.subr.bf16.mxu0 %v2282_v13  ;;  %v2192_v25 = vpack.c.bf16 %v1001_v21, %v1000_v20  ;;  %v2294_v13 = vpack.c.bf16 %v1435_v8, %v1434_v6  ;;  %v1006_v20 = vld [vmem:[#allocation9 + $0x160] sm:$0xff]  ;;  %v1007_v21 = vld [vmem:[#allocation9 + $0x168] sm:$0xff] }
 0x207   :  { %2183 = vmatprep.subr.bf16.mxu1 %v2182_v39  ;;  %2285 = vmatpush3.bf16.msra.mxu0 %v2284_v14  ;;  %v2194_v39 = vpack.c.bf16 %v1019_v38, %v1018_v33  ;;  %v2296_v14 = vpack.c.bf16 %v1419_v12, %v1418_v9  ;;  %v1024_v33 = vld [vmem:[#allocation9 + $0x1f0] sm:$0xff]  ;;  %v1025_v38 = vld [vmem:[#allocation9 + $0x1f8] sm:$0xff] }
 0x208   :  { %2287 = vmatprep.subr.bf16.mxu0 %v2286_v29  ;;  %v2298_v29 = vpack.c.bf16 %v1437_v26, %v1436_v24  ;;  %v816_v24 = vsub.s32 1, %v2561_v58 }
 0x20a   :  { %2185 = vmatpush3.bf16.msra.mxu1 %v2184_v45  ;;  %v2196_v45 = vpack.c.bf16 %v1003_v42, %v1002_v40  ;;  %v2206_v40 = vpack.c.bf16 %v1025_v38, %v1024_v33  ;;  %v1009_v42 = vld [vmem:[#allocation9 + $0x178] sm:$0xff] }
 0x20b   :  { %2187 = vmatprep.subr.bf16.mxu1 %v2186_v60  ;;  %2289 = vmatpush3.bf16.msra.mxu0 %v2288_v32  ;;  %v2198_v60 = vpack.c.bf16 %v1021_v59, %v1020_v54  ;;  %v2300_v32 = vpack.c.bf16 %v1421_v28, %v1420_v27  ;;  %v928_v54 = vld [vmem:[#allocation9 + $0x80] sm:$0xff]  ;;  %v929_v59 = vld [vmem:[#allocation9 + $0x88] sm:$0xff] }
 0x20c   :  { %2291 = vmatprep.subr.bf16.mxu0 %v2290_v52  ;;  %v1423_v52 = vld [vmem:[#allocation9 + $0x378] sm:$0xff] }
 0x20e   :  { %2189 = vmatpush3.bf16.msra.mxu1 %v2188_v7  ;;  %v2200_v7 = vpack.c.bf16 %v1005_v63, %v1004_v61  ;;  %v806_v61 = vsub.s32 0, %v2561_v58 }
 0x20f   :  { %2191 = vmatprep.subr.bf16.mxu1 %v2190_v19  ;;  %2293 = vmatpush3.bf16.msra.mxu0 %v2292_v53  ;;  %v2202_v19 = vpack.c.bf16 %v1023_v18, %v1022_v15  ;;  %v2304_v53 = vpack.c.bf16 %v1423_v52, %v1422_v50 }
 0x210   :  { %2295 = vmatprep.subr.bf16.mxu0 %v2294_v13 }
 0x212   :  { %2193 = vmatpush3.bf16.msra.mxu1 %v2192_v25  ;;  %v2204_v25 = vpack.c.bf16 %v1007_v21, %v1006_v20 }
 0x213   :  { %2195 = vmatprep.subr.bf16.mxu1 %v2194_v39  ;;  %2297 = vmatpush3.bf16.msra.mxu0 %v2296_v14  ;;  %v1008_v39 = vld [vmem:[#allocation9 + $0x170] sm:$0xff] }
 0x214   :  { %2299 = vmatprep.subr.bf16.mxu0 %v2298_v29  ;;  %v2208_v47 = vpack.c.bf16 %v1009_v42, %v1008_v39 }
 0x216   :  { %2197 = vmatpush3.bf16.msra.mxu1 %v2196_v45  ;;  %v1439_v45 = vld [vmem:[#allocation9 + $0x3f8] sm:$0xff] }
 0x217   :  { %2199 = vmatprep.subr.bf16.mxu1 %v2198_v60  ;;  %v2302_v49 = vpack.c.bf16 %v1439_v45, %v1438_v44  ;;  %2301 = vmatpush3.bf16.msra.mxu0 %v2300_v32  ;;  %v2210_v60 = vpack.c.bf16 %v929_v59, %v928_v54 }
 0x219   :  { %2303 = vmatprep.subr.bf16.mxu0 %v2302_v49 }
 0x21a   :  { %2201 = vmatpush3.bf16.msra.mxu1 %v2200_v7 }
 0x21b   :  { %2203 = vmatprep.subr.bf16.mxu1 %v2202_v19  ;;  %2305 = vmatpush3.bf16.msra.mxu0 %v2304_v53 }
 0x21e   :  { %2205 = vmatpush3.bf16.msra.mxu1 %v2204_v25 }
 0x21f   :  { %2207 = vmatprep.subr.bf16.mxu1 %v2206_v40 }
 0x222   :  { %2209 = vmatpush3.bf16.msra.mxu1 %v2208_v47 }
 0x223   :  { %2211 = vmatprep.subr.bf16.mxu1 %v2210_v60 }
 0x2d8   :  { %v793_v63 = vpop.f32.mrb[0].mxu1 }
 0x2d9   :  { %v797_v6 = vmul.f32 0.001953125, %v793_v63  ;;  %v1990_v7 = vpop.f32.mrb[1].mxu1 }
 0x2db   :  { %v798_v8 = vmul.f32 %v797_v6, %v797_v6  ;;  %v807_v9 = vrot.slane %v797_v6, %v806_v61 }
 0x2dd   :  { %v800_v12 = vrot.slane %v798_v8, 7  ;;  %v808_v13 = vsub.f32 %v2769_v36, %v807_v9  ;;  %v809_v14 = vsub.f32 %v2773_v62, %v807_v9  ;;  %v810_v15 = vsub.f32 %v2783_v43, %v807_v9  ;;  %v1725_v36 = vld [vmem:[%s2958_s3] ss:$0 sm:$0xff] }
 0x2de   :  { %v811_v18 = vsub.f32 %v2790_v48, %v807_v9  ;;  %v1726_v48 = vld [vmem:[%s2958_s3 + $0x1] ss:$0 sm:$0xff] }
 0x2df   :  { %v802_v19 = vsub.f32 %v797_v6, %v800_v12 }
 0x2e1   :  { %v803_v20 = vmax.f32 %v802_v19, 0.0 }
 0x2e3   :  { %v812_v21 = vadd.f32 1e-05, %v803_v20 }
 0x2e5   :  { %2367 = vrsqrt.f32 %v812_v21 }
 0x2ef   :  { %v2368_v25 = vpop.eup %2367 }
 0x2f0   :  { %v817_v26 = vrot.slane %v2368_v25, %v816_v24  ;;  %v930_v25 = vld [vmem:[#allocation9 + $0x90] sm:$0xff] }
 0x2f2   :  { %v818_v27 = vmul.f32 %v817_v26, %v808_v13  ;;  %v819_v62 = vmul.f32 %v817_v26, %v809_v14  ;;  %v820_v28 = vmul.f32 %v817_v26, %v810_v15  ;;  %v821_v43 = vmul.f32 %v817_v26, %v811_v18  ;;  %v912_v14 = vld [vmem:[#allocation9] sm:$0xff]  ;;  %v913_v15 = vld [vmem:[#allocation9 + $0x8] sm:$0xff]  ;;  %v931_v26 = vld [vmem:[#allocation9 + $0x98] sm:$0xff] }
 0x2f4   :  { %v826_v29 = vmul.f32 %v1725_v36, %v818_v27  ;;  %v827_v32 = vmul.f32 %v1725_v36, %v819_v62  ;;  %v828_v33 = vmul.f32 %v1725_v36, %v820_v28  ;;  %v829_v38 = vmul.f32 %v1725_v36, %v821_v43 }
 0x2f6   :  { %v834_v39 = vadd.f32 %v1726_v48, %v826_v29  ;;  %v835_v40 = vadd.f32 %v1726_v48, %v827_v32  ;;  %v836_v42 = vadd.f32 %v1726_v48, %v828_v33  ;;  %v837_v44 = vadd.f32 %v1726_v48, %v829_v38 }
 0x2f7   :  { %v2212_v38 = vpack.c.bf16 %v913_v15, %v912_v14  ;;  %v932_v14 = vld [vmem:[#allocation9 + $0xa0] sm:$0xff]  ;;  %v933_v15 = vld [vmem:[#allocation9 + $0xa8] sm:$0xff] }
 0x2f8   :  { %v838_v45 = vmax.f32 %v834_v39, 0.0  ;;  %v839_v47 = vmax.f32 %v835_v40, 0.0  ;;  %v840_v49 = vmax.f32 %v836_v42, 0.0  ;;  %v841_v50 = vmax.f32 %v837_v44, 0.0 }
 0x2fa   :  { %v867_v52 = vrot.slane %v838_v45, 5  ;;  %v868_v53 = vrot.slane %v839_v47, 5  ;;  %v870_v54 = vrot.slane %v840_v49, 5  ;;  %v871_v59 = vrot.slane %v841_v50, 5 }
 0x2fb   :  { %v886_v60 = vrot.slane %v838_v45, 6  ;;  %v887_v63 = vrot.slane %v839_v47, 6  ;;  %v889_v6 = vrot.slane %v840_v49, 6  ;;  %v890_v7 = vrot.slane %v841_v50, 6 }
 0x2fc   :  { %v2814_v8 = vsel %vm866_vm13, %v867_v52, %v868_v53  ;;  %v2816_v9 = vsel %vm866_vm13, %v870_v54, %v871_v59  ;;  %879 = vst [vmem:[#allocation3] sm:$0xf8] %v867_v52  ;;  %881 = vst [vmem:[#allocation3 + $0x20] sm:$0x7] %v868_v53  ;;  %vm1212_vm13 = vcmask 1043456  }
 0x2fd   :  { %882 = vst [vmem:[#allocation3 + $0x30] sm:$0xf8] %v870_v54  ;;  %884 = vst [vmem:[#allocation3 + $0x50] sm:$0x7] %v871_v59  ;;  %v2819_v12 = vsel %vm885_vm0, %v886_v60, %v887_v63  ;;  %v2822_v13 = vsel %vm885_vm0, %v889_v6, %v890_v7  ;;  %v966_v20 = vrot.slane %v2814_v8, 2  ;;  %v1380_v21 = vrot.slane %v2814_v8, 6 }
 0x2fe   :  { %898 = vst [vmem:[#allocation3 + $0x8] sm:$0xfc] %v886_v60  ;;  %900 = vst [vmem:[#allocation3 + $0x28] sm:$0x3] %v887_v63  ;;  %v969_v18 = vrot.slane %v2819_v12, 2  ;;  %v1383_v19 = vrot.slane %v2819_v12, 6  ;;  %v2214_v54 = vpack.c.bf16 %v931_v26, %v930_v25 }
 0x2ff   :  { %901 = vst [vmem:[#allocation3 + $0x38] sm:$0xfc] %v889_v6  ;;  %903 = vst [vmem:[#allocation3 + $0x58] sm:$0x3] %v890_v7  ;;  %v914_v59 = vld [vmem:[#allocation9 + $0x10] sm:$0xff]  ;;  %v915_v60 = vld [vmem:[#allocation9 + $0x18] sm:$0xff] }
 0x300   :  { %v2216_v26 = vpack.c.bf16 %v915_v60, %v914_v59 }
 0x303   :  { %v944_v36 = vld [vmem:[#allocation3] sm:$0xfc]  ;;  %v946_v62 = vld [vmem:[#allocation3 + $0x20] sm:$0x3] }
 0x304   :  { %v1363_v27 = vld [vmem:[#allocation3] sm:$0xc0]  ;;  %v965_v48 = vrot.slane %v944_v36, 2  ;;  %v1365_v49 = vld [vmem:[#allocation3 + $0x20] sm:$0x3f]  ;;  %v971_v6 = vrot.slane %v946_v62, 2 }
 0x305   :  { %v945_v28 = vld [vmem:[#allocation3 + $0x8] sm:$0xfc]  ;;  %v1379_v29 = vrot.slane %v1363_v27, 6  ;;  %v947_v39 = vld [vmem:[#allocation3 + $0x28] sm:$0x3]  ;;  %v1385_v7 = vrot.slane %v1365_v49, 6 }
 0x306   :  { %v1364_v43 = vld [vmem:[#allocation3 + $0x8] sm:$0xc0]  ;;  %v968_v32 = vrot.slane %v945_v28, 2  ;;  %v1366_v40 = vld [vmem:[#allocation3 + $0x28] sm:$0x3f]  ;;  %v967_v42 = vsel %vm964_vm3, %v965_v48, %v966_v20  ;;  %v973_v45 = vrot.slane %v947_v39, 2 }
 0x307   :  { %v1382_v33 = vrot.slane %v1364_v43, 6  ;;  %v1381_v44 = vsel %vm885_vm0, %v1379_v29, %v1380_v21  ;;  %v1387_v47 = vrot.slane %v1366_v40, 6  ;;  %v949_v50 = vld [vmem:[#allocation3 + $0x38] sm:$0xfc]  ;;  %v948_v28 = vld [vmem:[#allocation3 + $0x30] sm:$0xfc]  ;;  %v2218_v40 = vpack.c.bf16 %v933_v15, %v932_v14 }
 0x308   :  { %v970_v52 = vsel %vm964_vm3, %v968_v32, %v969_v18  ;;  %v1368_v63 = vld [vmem:[#allocation3 + $0x38] sm:$0xc0]  ;;  %v974_v36 = vsel %vm964_vm3, %v969_v18, %v973_v45  ;;  %v978_v27 = vrot.slane %v949_v50, 2  ;;  %v1367_v43 = vld [vmem:[#allocation3 + $0x30] sm:$0xc0]  ;;  %v916_v29 = vld [vmem:[#allocation9 + $0x20] sm:$0xff] }
 0x309   :  { %v1384_v53 = vsel %vm885_vm0, %v1382_v33, %v1383_v19  ;;  %1090 = vmatprep.mubr.f32.mxu1 %v970_v52  ;;  %v1388_v25 = vsel %vm885_vm0, %v1383_v19, %v1387_v47  ;;  %v1392_v48 = vrot.slane %v1368_v63, 6  ;;  %v917_v32 = vld [vmem:[#allocation9 + $0x28] sm:$0xff]  ;;  %v951_v33 = vld [vmem:[#allocation3 + $0x58] sm:$0x3]  ;;  %v979_v62 = vrot.slane %v2822_v13, 2  ;;  %v934_v19 = vld [vmem:[#allocation9 + $0xb0] sm:$0xff] }
 0x30a   :  { %1504 = vmatprep.mubr.f32.mxu0 %v1384_v53  ;;  %1091 = vmatmul.mubr.f32.vlgmr.msra.gmra.mrb[2].mxu1 %v967_v42  ;;  %v1393_v39 = vrot.slane %v2822_v13, 6  ;;  %v1370_v18 = vld [vmem:[#allocation3 + $0x58] sm:$0x3f]  ;;  %v972_v42 = vsel %vm964_vm3, %v966_v20, %v971_v6  ;;  %v1389_v45 = vrot.slane %v1367_v43, 6  ;;  %v2220_v50 = vpack.c.bf16 %v917_v32, %v916_v29  ;;  %v950_v53 = vld [vmem:[#allocation3 + $0x50] sm:$0x3] }
 0x30b   :  { %1505 = vmatmul.mubr.f32.vlgmr.msra.gmra.mrb[8].mxu0 %v1381_v44  ;;  %2213 = vmatpush3.bf16.msra.mxu1 %v2212_v38  ;;  %v1386_v38 = vsel %vm885_vm0, %v1380_v21, %v1385_v7  ;;  %v975_v44 = vrot.slane %v948_v28, 2  ;;  %v935_v47 = vld [vmem:[#allocation9 + $0xb8] sm:$0xff]  ;;  %v980_v49 = vsel %vm964_vm3, %v978_v27, %v979_v62  ;;  %v983_v52 = vrot.slane %v951_v33, 2  ;;  %v918_v6 = vld [vmem:[#allocation9 + $0x30] sm:$0xff]  ;;  %v936_v28 = vld [vmem:[#allocation9 + $0xc0] sm:$0xff] }
 0x30c   :  { %1095 = vmatprep.mubr.f32.mxu1 %v974_v36  ;;  %1509 = vmatprep.mubr.f32.mxu0 %v1388_v25  ;;  %v1394_v59 = vsel %vm885_vm0, %v1392_v48, %v1393_v39  ;;  %v976_v20 = vrot.slane %v2816_v9, 2  ;;  %v1390_v21 = vrot.slane %v2816_v9, 6  ;;  %v1397_v60 = vrot.slane %v1370_v18, 6  ;;  %v919_v7 = vld [vmem:[#allocation9 + $0x38] sm:$0xff]  ;;  %v937_v43 = vld [vmem:[#allocation9 + $0xc8] sm:$0xff]  ;;  %v920_v32 = vld [vmem:[#allocation9 + $0x40] sm:$0xff] }
 0x30d   :  { %2215 = vmatprep.subr.bf16.mxu1 %v2214_v54  ;;  %v1369_v54 = vld [vmem:[#allocation3 + $0x50] sm:$0x3f]  ;;  %v2222_v63 = vpack.c.bf16 %v935_v47, %v934_v19  ;;  %v981_v36 = vrot.slane %v950_v53, 2  ;;  %v984_v25 = vsel %vm964_vm3, %v979_v62, %v983_v52  ;;  %v2224_v48 = vpack.c.bf16 %v919_v7, %v918_v6  ;;  %v921_v33 = vld [vmem:[#allocation9 + $0x48] sm:$0xff]  ;;  %v923_v19 = vld [vmem:[#allocation9 + $0x58] sm:$0xff] }
 0x30e   :  { %1096 = vmatmul.mubr.f32.gmra.mrb[4].mxu1 %v972_v42  ;;  %v977_v14 = vsel %vm964_vm3, %v975_v44, %v976_v20  ;;  %v1391_v15 = vsel %vm885_vm0, %v1389_v45, %v1390_v21  ;;  %v1395_v27 = vrot.slane %v1369_v54, 6  ;;  %v2226_v29 = vpack.c.bf16 %v937_v43, %v936_v28  ;;  %v938_v42 = vld [vmem:[#allocation9 + $0xd0] sm:$0xff]  ;;  %v905_v44 = vld [vmem:[#allocation3 + $0x8] sm:$0xff]  ;;  %v940_v47 = vld [vmem:[#allocation9 + $0xe0] sm:$0xff] }
 0x30f   :  { %1510 = vmatmul.mubr.f32.gmra.mrb[10].mxu0 %v1386_v38  ;;  %2217 = vmatpush3.bf16.msra.mxu1 %v2216_v26  ;;  %v1398_v26 = vsel %vm885_vm0, %v1393_v39, %v1397_v60  ;;  %v939_v38 = vld [vmem:[#allocation9 + $0xd8] sm:$0xff]  ;;  %v2228_v62 = vpack.c.bf16 %v921_v33, %v920_v32  ;;  %v922_v45 = vld [vmem:[#allocation9 + $0x50] sm:$0xff]  ;;  %v924_v53 = vld [vmem:[#allocation9 + $0x60] sm:$0xff] }
 0x310   :  { %1100 = vmatprep.mubr.f32.mxu1 %v980_v49  ;;  %1514 = vmatprep.mubr.f32.mxu0 %v1394_v59  ;;  %v1396_v18 = vsel %vm885_vm0, %v1390_v21, %v1395_v27  ;;  %v2230_v39 = vpack.c.bf16 %v939_v38, %v938_v42  ;;  %v941_v49 = vld [vmem:[#allocation9 + $0xe8] sm:$0xff]  ;;  %v942_v59 = vld [vmem:[#allocation9 + $0xf0] sm:$0xff]  ;;  %v927_v6 = vld [vmem:[#allocation9 + $0x78] sm:$0xff] }
 0x311   :  { %2219 = vmatprep.subr.bf16.mxu1 %v2218_v40  ;;  %v982_v40 = vsel %vm964_vm3, %v976_v20, %v981_v36  ;;  %v2234_v52 = vpack.c.bf16 %v941_v49, %v940_v47  ;;  %v925_v54 = vld [vmem:[#allocation9 + $0x68] sm:$0xff]  ;;  %v943_v20 = vld [vmem:[#allocation9 + $0xf8] sm:$0xff]  ;;  %v1258_v7 = vld [vmem:[#allocation9 + $0x280] sm:$0xff] }
 0x312   :  { %1101 = vmatmul.mubr.f32.gmra.mrb[6].mxu1 %v977_v14  ;;  %v2236_v21 = vpack.c.bf16 %v925_v54, %v924_v53  ;;  %v2238_v60 = vpack.c.bf16 %v943_v20, %v942_v59  ;;  %v1259_v14 = vld [vmem:[#allocation9 + $0x288] sm:$0xff]  ;;  %v1242_v27 = vld [vmem:[#allocation9 + $0x200] sm:$0xff]  ;;  %v1260_v43 = vld [vmem:[#allocation9 + $0x290] sm:$0xff] }
 0x313   :  { %1515 = vmatmul.mubr.f32.gmra.mrb[12].mxu0 %v1391_v15  ;;  %2221 = vmatpush3.bf16.msra.mxu1 %v2220_v50  ;;  %v2232_v50 = vpack.c.bf16 %v923_v19, %v922_v45  ;;  %v2242_v36 = vpack.c.bf16 %v1259_v14, %v1258_v7  ;;  %v1243_v28 = vld [vmem:[#allocation9 + $0x208] sm:$0xff]  ;;  %v1245_v32 = vld [vmem:[#allocation9 + $0x218] sm:$0xff]  ;;  %v904_v33 = vld [vmem:[#allocation3] sm:$0xff] }
 0x314   :  { %1105 = vmatprep.mubr.f32.mxu1 %v984_v25  ;;  %1519 = vmatprep.mubr.f32.mxu0 %v1398_v26  ;;  %v1261_v25 = vld [vmem:[#allocation9 + $0x298] sm:$0xff]  ;;  %v2244_v26 = vpack.c.bf16 %v1243_v28, %v1242_v27  ;;  %v1197_v49 = vld [vmem:[#allocation3 + $0x8] sm:$0xf0]  ;;  %v908_v54 = vld [vmem:[#allocation3 + $0x30] sm:$0xff] }
 0x315   :  { %2223 = vmatprep.subr.bf16.mxu1 %v2222_v63  ;;  %v926_v63 = vld [vmem:[#allocation9 + $0x70] sm:$0xff]  ;;  %v1265_v45 = vld [vmem:[#allocation9 + $0x2b8] sm:$0xff]  ;;  %v1266_v59 = vld [vmem:[#allocation9 + $0x2c0] sm:$0xff] }
 0x316   :  { %1106 = vmatmul.mubr.f32.gmra.mrb[8].mxu1 %v982_v40  ;;  %v2240_v15 = vpack.c.bf16 %v927_v6, %v926_v63  ;;  %v1262_v40 = vld [vmem:[#allocation9 + $0x2a0] sm:$0xff]  ;;  %v909_v19 = vld [vmem:[#allocation3 + $0x38] sm:$0xff]  ;;  %v1267_v20 = vld [vmem:[#allocation9 + $0x2c8] sm:$0xff]  ;;  %v1217_v63 = vrot.slane %v2819_v12, 4 }
 0x317   :  { %1520 = vmatmul.mubr.f32.gmra.mrb[14].mxu0 %v1396_v18  ;;  %2225 = vmatpush3.bf16.msra.mxu1 %v2224_v48  ;;  %v2246_v48 = vpack.c.bf16 %v1261_v25, %v1260_v43  ;;  %v1263_v18 = vld [vmem:[#allocation9 + $0x2a8] sm:$0xff]  ;;  %v1249_v53 = vld [vmem:[#allocation9 + $0x238] sm:$0xff]  ;;  %v2258_v6 = vpack.c.bf16 %v1267_v20, %v1266_v59  ;;  %v1250_v7 = vld [vmem:[#allocation9 + $0x240] sm:$0xff] }
 0x318   :  { %1175 = vmatprep.mubr.f32.mxu1 %v905_v44  ;;  %2227 = vmatprep.subr.bf16.mxu1 %v2226_v29  ;;  %v1244_v29 = vld [vmem:[#allocation9 + $0x210] sm:$0xff]  ;;  %v2250_v38 = vpack.c.bf16 %v1263_v18, %v1262_v40  ;;  %v1246_v44 = vld [vmem:[#allocation9 + $0x220] sm:$0xff]  ;;  %v1251_v14 = vld [vmem:[#allocation9 + $0x248] sm:$0xff] }
 0x319   :  { %v2248_v42 = vpack.c.bf16 %v1245_v32, %v1244_v29  ;;  %v2260_v28 = vpack.c.bf16 %v1251_v14, %v1250_v7  ;;  %v1252_v25 = vld [vmem:[#allocation9 + $0x250] sm:$0xff]  ;;  %v1271_v29 = vld [vmem:[#allocation9 + $0x2e8] sm:$0xff]  ;;  %v1203_v7 = vld [vmem:[#allocation3 + $0x58] sm:$0xf] }
 0x31a   :  { %v1255_v40 = vld [vmem:[#allocation9 + $0x268] sm:$0xff]  ;;  %v1272_v18 = vld [vmem:[#allocation9 + $0x2f0] sm:$0xff]  ;;  %vm3005_vm0 = vmpackc.low %vm2573_vm2, %vm2568_vm1 }
 0x31b   :  { %2229 = vmatpush3.bf16.msra.mxu1 %v2228_v62  ;;  %v1247_v62 = vld [vmem:[#allocation9 + $0x228] sm:$0xff]  ;;  %vm3006_vm1 = vmpackc.low %vm2615_vm6, %vm2610_vm5  ;;  %vm3009_vm6 = vmmov 0  }
 0x31c   :  { %2231 = vmatprep.subr.bf16.mxu1 %v2230_v39  ;;  %v1264_v39 = vld [vmem:[#allocation9 + $0x2b0] sm:$0xff]  ;;  %v2252_v47 = vpack.c.bf16 %v1247_v62, %v1246_v44  ;;  %vm3007_vm2 = vmpackc.low %vm2638_vm9, %vm2633_vm8  ;;  %vm3011_vm9 = vnez %v2996_v23 }
 0x31d   :  { %v1256_v62 = vld [vmem:[#allocation9 + $0x270] sm:$0xff]  ;;  %vm3008_vm5 = vmpackc.low %vm2661_vm12, %vm2656_vm11  ;;  %vm3012_vm11 = vnez %v2994_v22 }
 0x31e   :  { %vm3010_vm8 = vmpackc.low %vm2684_vm15, %vm2679_vm14  ;;  %vm3015_vm14 = vnez %v3002_v34 }
 0x31f   :  { %2233 = vmatpush3.bf16.msra.mxu1 %v2232_v50  ;;  %v2254_v50 = vpack.c.bf16 %v1265_v45, %v1264_v39  ;;  %v1257_v39 = vld [vmem:[#allocation9 + $0x278] sm:$0xff]  ;;  %v1196_v45 = vld [vmem:[#allocation3] sm:$0xf0]  ;;  %vm3013_vm12 = vmpackc.low %vm3011_vm9, %vm3012_vm11 }
 0x320   :  { %2235 = vmatprep.subr.bf16.mxu1 %v2234_v52  ;;  %v1248_v52 = vld [vmem:[#allocation9 + $0x230] sm:$0xff]  ;;  %vm3014_vm3 = vmpackc.low %vm2732_vm7, %vm2727_vm10 }
 0x321   :  { %vm3016_vm15 = vmpackc.low %vm2755_vm4, %vm3015_vm14  ;;  %vm3017_vm4 = vcmask 1040384  }
 0x323   :  { %2237 = vmatpush3.bf16.msra.mxu1 %v2236_v21  ;;  %v1216_v21 = vrot.slane %v1197_v49, 4  ;;  %v1213_v49 = vrot.slane %v1196_v45, 4 }
 0x324   :  { %2239 = vmatprep.subr.bf16.mxu1 %v2238_v60  ;;  %v2256_v60 = vpack.c.bf16 %v1249_v53, %v1248_v52  ;;  %v1198_v52 = vld [vmem:[#allocation3 + $0x20] sm:$0xf]  ;;  %v1214_v53 = vrot.slane %v2814_v8, 4 }
 0x325   :  { %v1218_v27 = vsel %vm1212_vm13, %v1216_v21, %v1217_v63  ;;  %v1219_v20 = vrot.slane %v1198_v52, 4 }
 0x326   :  { %v1215_v59 = vsel %vm1212_vm13, %v1213_v49, %v1214_v53 }
 0x327   :  { %2241 = vmatpush3.bf16.msra.mxu1 %v2240_v15  ;;  %v1268_v15 = vld [vmem:[#allocation9 + $0x2d0] sm:$0xff]  ;;  %v1220_v14 = vsel %vm1212_vm13, %v1214_v53, %v1219_v20 }
 0x328   :  { %2243 = vmatprep.subr.bf16.mxu1 %v2242_v36  ;;  %v1269_v36 = vld [vmem:[#allocation9 + $0x2d8] sm:$0xff] }
 0x329   :  { %v2262_v43 = vpack.c.bf16 %v1269_v36, %v1268_v15  ;;  %v1231_v36 = vrot.slane %v1203_v7, 4 }
 0x32a   :  { %1176 = vmatmul.mubr.f32.vlgmr.msra.gmra.mrb[10].mxu1 %v904_v33  ;;  %v1254_v33 = vld [vmem:[#allocation9 + $0x260] sm:$0xff] }
 0x32b   :  { %1180 = vmatprep.mubr.f32.mxu1 %v2819_v12  ;;  %2245 = vmatpush3.bf16.msra.mxu1 %v2244_v26  ;;  %v1253_v26 = vld [vmem:[#allocation9 + $0x258] sm:$0xff] }
 0x32c   :  { %2247 = vmatprep.subr.bf16.mxu1 %v2246_v48  ;;  %v1270_v48 = vld [vmem:[#allocation9 + $0x2e0] sm:$0xff]  ;;  %v2264_v12 = vpack.c.bf16 %v1253_v26, %v1252_v25 }
 0x32d   :  { %v2266_v32 = vpack.c.bf16 %v1271_v29, %v1270_v48 }
 0x32e   :  { %1181 = vmatmul.mubr.f32.gmra.mrb[12].mxu1 %v2814_v8  ;;  %v1227_v8 = vrot.slane %v2822_v13, 4 }
 0x32f   :  { %1185 = vmatprep.mubr.f32.mxu1 %v909_v19  ;;  %2249 = vmatpush3.bf16.msra.mxu1 %v2248_v42  ;;  %v1273_v42 = vld [vmem:[#allocation9 + $0x2f8] sm:$0xff]  ;;  %v2272_v19 = vpack.c.bf16 %v1257_v39, %v1256_v62 }
 0x330   :  { %2251 = vmatprep.subr.bf16.mxu1 %v2250_v38  ;;  %v2268_v38 = vpack.c.bf16 %v1255_v40, %v1254_v33  ;;  %v2270_v44 = vpack.c.bf16 %v1273_v42, %v1272_v18 }
 0x332   :  { %1186 = vmatmul.mubr.f32.gmra.mrb[14].mxu1 %v908_v54  ;;  %v1201_v54 = vld [vmem:[#allocation3 + $0x38] sm:$0xf0] }
 0x333   :  { %1190 = vmatprep.mubr.f32.mxu1 %v2822_v13  ;;  %2253 = vmatpush3.bf16.msra.mxu1 %v2252_v47  ;;  %v1199_v47 = vld [vmem:[#allocation3 + $0x28] sm:$0xf]  ;;  %v1232_v13 = vsel %vm1212_vm13, %v1227_v8, %v1231_v36 }
 0x334   :  { %2255 = vmatprep.subr.bf16.mxu1 %v2254_v50  ;;  %v1221_v50 = vrot.slane %v1199_v47, 4 }
 0x336   :  { %1191 = vmatmul.mubr.f32.gmra.mrb[16].mxu1 %v2816_v9  ;;  %v1222_v21 = vsel %vm1212_vm13, %v1217_v63, %v1221_v50 }
 0x337   :  { %2257 = vmatpush3.bf16.msra.mxu1 %v2256_v60  ;;  %1338 = vmatprep.mubr.f32.mxu1 %v1218_v27  ;;  %v1226_v60 = vrot.slane %v1201_v54, 4  ;;  %v1202_v27 = vld [vmem:[#allocation3 + $0x50] sm:$0xf] }
 0x338   :  { %2259 = vmatprep.subr.bf16.mxu1 %v2258_v6  ;;  %v1200_v6 = vld [vmem:[#allocation3 + $0x30] sm:$0xf0]  ;;  %v1229_v2 = vrot.slane %v1202_v27, 4 }
 0x339   :  { %v1223_v15 = vrot.slane %v1200_v6, 4  ;;  %v1228_v63 = vsel %vm1212_vm13, %v1226_v60, %v1227_v8 }
 0x33b   :  { %2261 = vmatpush3.bf16.msra.mxu1 %v2260_v28  ;;  %v1224_v28 = vrot.slane %v2816_v9, 4 }
 0x33c   :  { %2263 = vmatprep.subr.bf16.mxu1 %v2262_v43 }
 0x33d   :  { %v1225_v1 = vsel %vm1212_vm13, %v1223_v15, %v1224_v28  ;;  %v1230_v55 = vsel %vm1212_vm13, %v1224_v28, %v1229_v2 }
 0x33f   :  { %2265 = vmatpush3.bf16.msra.mxu1 %v2264_v12 }
 0x340   :  { %2267 = vmatprep.subr.bf16.mxu1 %v2266_v32 }
 0x343   :  { %2269 = vmatpush3.bf16.msra.mxu1 %v2268_v38 }
 0x344   :  { %2271 = vmatprep.subr.bf16.mxu1 %v2270_v44 }
 0x347   :  { %2273 = vmatpush3.bf16.msra.mxu1 %v2272_v19 }
 0x348   :  { %2306 = vmatprep.subr.bf16.mxu1 %v2474_v57 }
 0x34a   :  { %1339 = vmatmul.mubr.f32.vlgmr.msra.gmra.mrb[18].mxu1 %v1215_v59 }
 0x34b   :  { %1343 = vmatprep.mubr.f32.mxu1 %v1222_v21  ;;  %2308 = vmatpush3.bf16.msk.msra.mxu1 %vm3005_vm0, %v2475_v3 }
 0x34c   :  { %2309 = vmatprep.subr.bf16.mxu1 %v2474_v57 }
 0x34e   :  { %1344 = vmatmul.mubr.f32.gmra.mrb[20].mxu1 %v1220_v14 }
 0x34f   :  { %1348 = vmatprep.mubr.f32.mxu1 %v1228_v63  ;;  %2311 = vmatpush3.bf16.msk.msra.mxu1 %vm3006_vm1, %v2475_v3 }
 0x350   :  { %2312 = vmatprep.subr.bf16.mxu1 %v2474_v57 }
 0x352   :  { %1349 = vmatmul.mubr.f32.gmra.mrb[22].mxu1 %v1225_v1 }
 0x353   :  { %1353 = vmatprep.mubr.f32.mxu1 %v1232_v13  ;;  %2314 = vmatpush3.bf16.msk.msra.mxu1 %vm3007_vm2, %v2475_v3 }
 0x354   :  { %2315 = vmatprep.subr.bf16.mxu1 %v2474_v57 }
 0x356   :  { %1354 = vmatmul.mubr.f32.gmra.mrb[24].mxu1 %v1230_v55 }
 0x357   :  { %2317 = vmatpush3.bf16.msk.msra.mxu1 %vm3008_vm5, %v2475_v3  ;;  %2023 = vmatprep.mubr.msk.f32.mxu1 %vm3009_vm6, %v2472_v0 }
 0x358   :  { %2318 = vmatprep.subr.bf16.mxu1 %v2474_v57 }
 0x35b   :  { %2320 = vmatpush3.bf16.msk.msra.mxu1 %vm3010_vm8, %v2475_v3 }
 0x35c   :  { %2321 = vmatprep.subr.bf16.mxu1 %v2474_v57 }
 0x35f   :  { %2323 = vmatpush3.bf16.msk.msra.mxu1 %vm3013_vm12, %v2475_v3 }
 0x360   :  { %2324 = vmatprep.subr.bf16.mxu1 %v2474_v57 }
 0x363   :  { %2326 = vmatpush3.bf16.msk.msra.mxu1 %vm3014_vm3, %v2475_v3 }
 0x364   :  { %2327 = vmatprep.subr.bf16.mxu1 %v2474_v57 }
 0x367   :  { %2329 = vmatpush3.bf16.msk.msra.mxu1 %vm3016_vm15, %v2475_v3 }
 0x3dd   :  { %v1795_v0 = vpop.f32.mrb[2].mxu1 }
 0x3de   :  { %v1927_v56 = vpop.f32.mrb[8].mxu0  ;;  %v1796_v4 = vpop.f32.mrb[3].mxu1 }
 0x3df   :  { %v1928_v5 = vpop.f32.mrb[9].mxu0  ;;  %v1797_v10 = vadd.f32 %v1796_v4, %v1795_v0 }
 0x3e0   :  { %v1929_v11 = vadd.f32 %v1928_v5, %v1927_v56 }
 0x3e1   :  { %v1798_v16 = vpop.f32.mrb[4].mxu1 }
 0x3e2   :  { %v1930_v17 = vpop.f32.mrb[10].mxu0  ;;  %v1799_v22 = vpop.f32.mrb[5].mxu1 }
 0x3e3   :  { %v1931_v23 = vpop.f32.mrb[11].mxu0  ;;  %v1800_v30 = vadd.f32 %v1799_v22, %v1798_v16 }
 0x3e4   :  { %v1932_v31 = vadd.f32 %v1931_v23, %v1930_v17 }
 0x3e5   :  { %v1801_v57 = vpop.f32.mrb[6].mxu1 }
 0x3e6   :  { %v1933_v9 = vpop.f32.mrb[12].mxu0  ;;  %v1802_v43 = vpop.f32.mrb[7].mxu1 }
 0x3e7   :  { %v1934_v35 = vpop.f32.mrb[13].mxu0  ;;  %v1803_v25 = vadd.f32 %v1802_v43, %v1801_v57 }
 0x3e8   :  { %v1935_v34 = vadd.f32 %v1934_v35, %v1933_v9 }
 0x3e9   :  { %v1804_v26 = vpop.f32.mrb[8].mxu1 }
 0x3ea   :  { %v1936_v3 = vpop.f32.mrb[14].mxu0  ;;  %v1805_v48 = vpop.f32.mrb[9].mxu1 }
 0x3eb   :  { %v1937_v29 = vpop.f32.mrb[15].mxu0  ;;  %v1806_v12 = vadd.f32 %v1805_v48, %v1804_v26 }
 0x3ec   :  { %v1938_v32 = vadd.f32 %v1937_v29, %v1936_v3 }
 0x3fd   :  { %v1839_v33 = vpop.f32.mrb[10].mxu1 }
 0x3fe   :  { %v1840_v40 = vpop.f32.mrb[11].mxu1 }
 0x3ff   :  { %v1841_v18 = vadd.f32 %v1840_v40, %v1839_v33 }
 0x401   :  { %v1178_v42 = vadd.f32 %v1841_v18, %v1797_v10  ;;  %v1842_v38 = vpop.f32.mrb[12].mxu1 }
 0x402   :  { %v1843_v44 = vpop.f32.mrb[13].mxu1 }
 0x403   :  { %v1844_v62 = vadd.f32 %v1843_v44, %v1842_v38 }
 0x405   :  { %v1183_v39 = vadd.f32 %v1844_v62, %v1800_v30  ;;  %v1845_v45 = vpop.f32.mrb[14].mxu1 }
 0x406   :  { %v1846_v19 = vpop.f32.mrb[15].mxu1 }
 0x407   :  { %v1847_v47 = vadd.f32 %v1846_v19, %v1845_v45 }
 0x409   :  { %v1188_v49 = vadd.f32 %v1847_v47, %v1803_v25  ;;  %v1848_v50 = vpop.f32.mrb[16].mxu1 }
 0x40a   :  { %v1849_v52 = vpop.f32.mrb[17].mxu1 }
 0x40b   :  { %v1850_v53 = vadd.f32 %v1849_v52, %v1848_v50 }
 0x40d   :  { %v1193_v54 = vadd.f32 %v1850_v53, %v1806_v12 }
 0x41d   :  { %v1883_v59 = vpop.f32.mrb[18].mxu1 }
 0x41e   :  { %v1884_v20 = vpop.f32.mrb[19].mxu1 }
 0x41f   :  { %v1885_v21 = vadd.f32 %v1884_v20, %v1883_v59  ;;  %v1744_v20 = vld [vmem:[%s2958_s3 + $0x2] ss:$0 sm:$0xff] }
 0x421   :  { %v1359_v60 = vadd.f32 %v1885_v21, %v1178_v42  ;;  %v1886_v6 = vpop.f32.mrb[20].mxu1  ;;  %v1727_v21 = vld [vmem:[%s2958_s3 + $0x4] ss:$0 sm:$0xff] }
 0x422   :  { %v1887_v7 = vpop.f32.mrb[21].mxu1 }
 0x423   :  { %v1525_v8 = vadd.f32 %v1929_v11, %v1359_v60  ;;  %v1888_v14 = vadd.f32 %v1887_v7, %v1886_v6 }
 0x425   :  { %v1360_v15 = vadd.f32 %v1888_v14, %v1183_v39  ;;  %v1889_v63 = vpop.f32.mrb[22].mxu1  ;;  %v1538_v4 = vmul.f32 %v1525_v8, %v1525_v8 }
 0x426   :  { %v1890_v36 = vpop.f32.mrb[23].mxu1 }
 0x427   :  { %v1526_v27 = vadd.f32 %v1932_v31, %v1360_v15  ;;  %v1891_v28 = vadd.f32 %v1890_v36, %v1889_v63  ;;  %v846_v63 = vadd.f32 %v1727_v21, %v2771_v37  ;;  %v847_v36 = vadd.f32 %v1727_v21, %v2781_v41 }
 0x429   :  { %v1361_v1 = vadd.f32 %v1891_v28, %v1188_v49  ;;  %v1892_v2 = vpop.f32.mrb[24].mxu1  ;;  %v1539_v55 = vmul.f32 %v1526_v27, %v1526_v27  ;;  %v1529_v5 = vadd.f32 %v1526_v27, %v1525_v8  ;;  %v849_v28 = vadd.f32 %v1727_v21, %v2795_v51 }
 0x42a   :  { %v1893_v13 = vpop.f32.mrb[25].mxu1 }
 0x42b   :  { %v1527_v0 = vadd.f32 %v1935_v34, %v1361_v1  ;;  %v1894_v56 = vadd.f32 %v1893_v13, %v1892_v2  ;;  %v1542_v17 = vadd.f32 %v1539_v55, %v1538_v4 }
 0x42d   :  { %v1540_v10 = vmul.f32 %v1527_v0, %v1527_v0  ;;  %v1362_v16 = vadd.f32 %v1894_v56, %v1193_v54  ;;  %v1530_v22 = vadd.f32 %v1529_v5, %v1527_v0 }
 0x42f   :  { %v1528_v23 = vadd.f32 %v1938_v32, %v1362_v16  ;;  %v1543_v11 = vadd.f32 %v1542_v17, %v1540_v10 }
 0x431   :  { %v1531_v30 = vadd.f32 %v1530_v22, %v1528_v23  ;;  %v1541_v57 = vmul.f32 %v1528_v23, %v1528_v23 }
 0x433   :  { %v1532_v9 = vrot.slane %v1531_v30, 4  ;;  %v1544_v43 = vadd.f32 %v1543_v11, %v1541_v57 }
 0x435   :  { %v1533_v31 = vadd.f32 %v1532_v9, %v1531_v30  ;;  %v1545_v35 = vrot.slane %v1544_v43, 4 }
 0x437   :  { %v1534_v25 = vrot.slane %v1533_v31, 2  ;;  %v1546_v26 = vadd.f32 %v1545_v35, %v1544_v43 }
 0x439   :  { %v1535_v3 = vadd.f32 %v1534_v25, %v1533_v31  ;;  %v1547_v48 = vrot.slane %v1546_v26, 2 }
 0x43b   :  { %v1536_v34 = vrot.slane %v1535_v3, 1  ;;  %v1548_v29 = vadd.f32 %v1547_v48, %v1546_v26 }
 0x43d   :  { %v1549_v12 = vrot.slane %v1548_v29, 1  ;;  %v1537_v33 = vadd.f32 %v1536_v34, %v1535_v3 }
 0x43f   :  { %v1550_v40 = vadd.f32 %v1549_v12, %v1548_v29 }
 0x441   :  { %v1551_v18 = vsel %vm3017_vm4, %v1537_v33, %v1550_v40 }
 0x442   :  { %2024 = vmatmul.mubr.f32.vlgmr.msra.gmra.mrb[26].mxu1 %v1551_v18 }
 0x515   :  { %v1618_v32 = vpop.f32.mrb[26].mxu1 }
 0x516   :  { %v1622_v42 = vmul.f32 0.001953125, %v1618_v32  ;;  %v2025_v38 = vpop.f32.mrb[27].mxu1 }
 0x518   :  { %v1623_v44 = vmul.f32 %v1622_v42, %v1622_v42  ;;  %v1632_v47 = vrot.slane %v1622_v42, %v806_v61 }
 0x51a   :  { %v1625_v62 = vrot.slane %v1623_v44, 7  ;;  %v1633_v50 = vsub.f32 %v1525_v8, %v1632_v47  ;;  %v1634_v52 = vsub.f32 %v1526_v27, %v1632_v47  ;;  %v1635_v53 = vsub.f32 %v1527_v0, %v1632_v47  ;;  %v1745_v8 = vld [vmem:[%s2958_s3 + $0x3] ss:$0 sm:$0xff]  ;;  %s2437_s3 = scalar_lea.vmem %s1681_s12, 512 }
 0x51b   :  { %v1636_v54 = vsub.f32 %v1528_v23, %v1632_v47  ;;  %v848_v27 = vadd.f32 %v1727_v21, %v2788_v46  ;;  %p2438_p10 = scmp.ne.s32.totalorder %s1681_s12, %s2437_s3  ;;  %p2443_p12 = scmp.lt.s32.totalorder %s2437_s3, %s2437_s3 }
 0x51c   :  { %v1627_v39 = vsub.f32 %v1622_v42, %v1625_v62 }
 0x51d   :  { %p2444_p13 = por %p2443_p12, %p2442_p11 }
 0x51e   :  { %v1628_v45 = vmax.f32 %v1627_v39, 0.0 }
 0x51f   :  { %p2445_p0 = pnand %p2444_p13, %p2438_p10 }
 0x520   :  { %v1637_v19 = vadd.f32 1e-05, %v1628_v45 }
 0x522   :  { %2369 = vrsqrt.f32 %v1637_v19 }
 0x52c   :  { %v2370_v49 = vpop.eup %2369 }
 0x52d   :  { %v1642_v59 = vrot.slane %v2370_v49, %v816_v24 }
 0x52f   :  { %v1643_v60 = vmul.f32 %v1642_v59, %v1633_v50  ;;  %v1644_v6 = vmul.f32 %v1642_v59, %v1634_v52  ;;  %v1645_v7 = vmul.f32 %v1642_v59, %v1635_v53  ;;  %v1646_v61 = vmul.f32 %v1642_v59, %v1636_v54 }
 0x531   :  { %v1651_v14 = vmul.f32 %v1744_v20, %v1643_v60  ;;  %v1652_v15 = vmul.f32 %v1744_v20, %v1644_v6  ;;  %v1653_v58 = vmul.f32 %v1744_v20, %v1645_v7  ;;  %v1654_v24 = vmul.f32 %v1744_v20, %v1646_v61 }
 0x533   :  { %v1659_v1 = vadd.f32 %v1745_v8, %v1651_v14  ;;  %v1660_v2 = vadd.f32 %v1745_v8, %v1652_v15  ;;  %v1661_v13 = vadd.f32 %v1745_v8, %v1653_v58  ;;  %v1662_v55 = vadd.f32 %v1745_v8, %v1654_v24 }
 0x535   :  { %v1663_v0 = vadd.f32 %v1659_v1, %v846_v63  ;;  %v1664_v56 = vadd.f32 %v1660_v2, %v847_v36  ;;  %v1665_v4 = vadd.f32 %v1661_v13, %v848_v27  ;;  %v1666_v5 = vadd.f32 %v1662_v55, %v849_v28 }
 0x537   :  { %v1667_v10 = vmax.f32 %v1663_v0, 0.0  ;;  %v1668_v16 = vmax.f32 %v1664_v56, 0.0  ;;  %v1669_v17 = vmax.f32 %v1665_v4, 0.0  ;;  %v1670_v37 = vmax.f32 %v1666_v5, 0.0 }
 0x539   :  { %1671 = vst [vmem:[#allocation10] sm:$0xff] %v1667_v10  ;;  %1672 = vst [vmem:[#allocation10 + $0x8] sm:$0xff] %v1668_v16 }
 0x53a   :  { %1673 = vst [vmem:[#allocation10 + $0x10] sm:$0xff] %v1669_v17  ;;  %1674 = vst [vmem:[#allocation10 + $0x18] sm:$0xff] %v1670_v37 }
 0x53b   :  { %2448 = shalt.err (!%p2445_p0)
}
 0x53c   :  { %s2449_s16 = scalar_lea.hbm %s2959_s4, 512 }
 0x53d   :  { %p2450_p1 = scmp.ne.s32.totalorder %s2959_s4, %s2449_s16  ;;  %p2453_p2 = scmp.lt.u32.totalorder %s2449_s16, %s2959_s4 }
 0x53f   :  { %p2455_p3 = pnand %p2453_p2, %p2450_p1 }
 0x541   :  { %2458 = shalt.err (!%p2455_p3)
}
 0x542   :  { %1686 = dma.vmem_to_hbm [thread:$0]  %s1681_s12, 512, %s2959_s4, [#allocation6], %s2469_s1, %s2469_s1, %s2470_s13  }
 0x543   :  { %2463 = dma.done.wait [#allocation6], 512  }
 0x544   :  { %2464 = vsyncadd [#allocation6], 4294966784 }
 0x545   :  { %1690 = vsyncpa [#allocation5], 1 }
 0x546   :  { %1691 = vsyncpa [#allocation8], 1 }
 0x547   :  { %1692 = vsyncpa [#allocation6], 1 }

</bundles_post_ra>
